<compile_context>
chip_gen: v7x
topology: tpu7x:2x2x1
jax: 0.10.0
libtpu: 0.0.40
codegen_flags: <defaults>
</compile_context>

<pallas_src>
import jax
import jax.numpy as jnp
import numpy as np
from jax import lax
from jax.experimental import pallas as pl
from jax.experimental.pallas import tpu as pltpu

# --- "config" / module hyper-parameters (small, consistent with the module) ---
VOCAB = 128        # len(vocabulary)
EMBED = 32         # word_embedding_size
HIDDEN = 32        # decoder_lstm_hidden_size
LAYERS = 2         # decoder_lstm_num_layers (two unrolled layers below)
MAX_SEQ = 8        # max_sequence_length
BATCH = 2
ROUNDS = 2
PAD_INDEX = 0
NEG = 1.0e10


def decoder_kernel(emb_ref, h0_ref,
                   wih0_ref, whh0_ref, b0_ref,
                   wih1_ref, whh1_ref, b1_ref,
                   wqkv_ref, bqkv_ref,
                   wout_ref, bout_ref, mask_ref,
                   out_ref,
                   seq_a, seq_b):
    T, Np, E = emb_ref.shape
    H = h0_ref.shape[-1]
    H4 = 4 * H

    h0 = h0_ref[...]
    c0 = jnp.zeros_like(h0)

    def run_layer(xw, whh_t, *, time_major_out=None, batch_major_out=None):
        # xw: (T, Np, 4H) precomputed x @ W_ih^T + (b_ih + b_hh)
        # PyTorch LSTM gate order (i, f, g, o).
        h, c = h0, c0
        for t in range(T):                       # static unroll, tiny T
            gates = xw[t] + jnp.dot(h, whh_t,
                                    preferred_element_type=jnp.float32)
            sig = jax.nn.sigmoid(gates)          # full (Np, 4H) tile
            th = jnp.tanh(gates)                 # full (Np, 4H) tile
            i = sig[:, 0:H]
            f = sig[:, H:2 * H]
            g = th[:, 2 * H:3 * H]
            o = sig[:, 3 * H:4 * H]
            c = f * c + i * g
            h = o * jnp.tanh(c)
            if time_major_out is not None:
                time_major_out[t] = h            # (T, Np, H) scratch
            else:
                batch_major_out[:, t, :] = h     # (Np, T, H) scratch

    # ---- 2-layer LSTM; init_hidden = encoder output (shared by both layers),
    # ---- init_cell = zeros, exactly as in the PyTorch forward. ----
    xw0 = (jnp.dot(emb_ref[...].reshape(T * Np, E), wih0_ref[...],
                   preferred_element_type=jnp.float32)
           + b0_ref[...]).reshape(T, Np, H4)
    run_layer(xw0, whh0_ref[...], time_major_out=seq_a)

    xw1 = (jnp.dot(seq_a[...].reshape(T * Np, H), wih1_ref[...],
                   preferred_element_type=jnp.float32)
           + b1_ref[...]).reshape(T, Np, H4)
    run_layer(xw1, whh1_ref[...], batch_major_out=seq_b)

    # TODO(synk): nn.Dropout(p=answer_dropout) applied as identity (inference
    # semantics); no RNG-based dropout mask in-kernel.

    # ---- Causal self-attention over the LSTM outputs (batch-major, no
    # ---- transpose needed — layer 2 already wrote (Np, T, H)). ----
    flat = seq_b[...].reshape(Np * T, H)
    qkv = (jnp.dot(flat, wqkv_ref[...], preferred_element_type=jnp.float32)
           + bqkv_ref[...]).reshape(Np, T, 3 * H)
    q = qkv[:, :, 0:H]
    k = qkv[:, :, H:2 * H]
    v = qkv[:, :, 2 * H:3 * H]

    scores = jnp.einsum('ntg,nsg->nts', q, k,
                        preferred_element_type=jnp.float32)   # (Np, T, T)
    scores = scores + mask_ref[...]              # additive causal mask (T, T)
    scores = scores - jnp.max(scores, axis=-1, keepdims=True)
    p = jnp.exp(scores)
    prob = p * pl.reciprocal(jnp.sum(p, axis=-1, keepdims=True), approx=True)
    ctx = jnp.einsum('nts,nsh->nth', prob, v,
                     preferred_element_type=jnp.float32)      # (Np, T, H)

    # lstm_to_words projection (V = 128 lanes -> lane-dense output).
    logits = (jnp.dot(ctx.reshape(Np * T, H), wout_ref[...],
                      preferred_element_type=jnp.float32)
              + bout_ref[...]).reshape(Np, T, -1)
    out_ref[...] = logits


def init_params(key):
    keys = jax.random.split(key, 17)

    def u(k, shape, scale=0.1):
        return jax.random.uniform(k, shape, jnp.float32, -scale, scale)

    emb = u(keys[0], (VOCAB, EMBED)).at[PAD_INDEX].set(0.0)   # padding_idx row
    return dict(
        embedding=emb,
        w_ih0=u(keys[1], (4 * HIDDEN, EMBED)),
        w_hh0=u(keys[2], (4 * HIDDEN, HIDDEN)),
        b_ih0=u(keys[3], (4 * HIDDEN,)),
        b_hh0=u(keys[4], (4 * HIDDEN,)),
        w_ih1=u(keys[5], (4 * HIDDEN, HIDDEN)),
        w_hh1=u(keys[6], (4 * HIDDEN, HIDDEN)),
        b_ih1=u(keys[7], (4 * HIDDEN,)),
        b_hh1=u(keys[8], (4 * HIDDEN,)),
        w_q=u(keys[9], (HIDDEN, HIDDEN)), b_q=u(keys[10], (HIDDEN,)),
        w_k=u(keys[11], (HIDDEN, HIDDEN)), b_k=u(keys[12], (HIDDEN,)),
        w_v=u(keys[13], (HIDDEN, HIDDEN)), b_v=u(keys[14], (HIDDEN,)),
        w_out=u(keys[15], (VOCAB, HIDDEN)), b_out=u(keys[16], (VOCAB,)),
    )


@jax.jit
def generative_decoder_forward(params, encoder_output, ans_in):
    """Training / stage-1 branch: returns per-token vocab scores (N, T, V)."""
    B, R, T = ans_in.shape
    N = B * R
    Np = ((N + 7) // 8) * 8                       # pad batch*rounds to full sublanes

    tokens = ans_in.reshape(N, T)
    emb = jnp.take(params['embedding'], tokens, axis=0)       # (N, T, E) glue gather
    emb_tm = jnp.transpose(emb, (1, 0, 2))                    # (T, N, E) time-major
    emb_tm = jnp.pad(emb_tm, ((0, 0), (0, Np - N), (0, 0)))
    h0 = jnp.pad(encoder_output.reshape(N, HIDDEN), ((0, Np - N), (0, 0)))

    # Fused QKV weights / bias, pre-transposed weights, pre-summed LSTM biases,
    # additive causal mask.
    wqkv = jnp.concatenate([params['w_q'].T, params['w_k'].T, params['w_v'].T],
                           axis=1)                            # (H, 3H)
    bqkv = jnp.concatenate([params['b_q'], params['b_k'],
                            params['b_v']]).reshape(1, -1)    # (1, 3H)
    mask_add = (jnp.tril(jnp.ones((T, T), jnp.float32)) - 1.0) * NEG

    args = (
        emb_tm, h0,
        params['w_ih0'].T, params['w_hh0'].T,
        (params['b_ih0'] + params['b_hh0']).reshape(1, -1),
        params['w_ih1'].T, params['w_hh1'].T,
        (params['b_ih1'] + params['b_hh1']).reshape(1, -1),
        wqkv, bqkv,
        params['w_out'].T, params['b_out'].reshape(1, -1),
        mask_add,
    )

    flops = int(
        2 * T * Np * EMBED * 4 * HIDDEN              # layer-1 input proj
        + 2 * T * Np * HIDDEN * 4 * HIDDEN           # layer-2 input proj
        + 2 * 2 * T * Np * HIDDEN * 4 * HIDDEN       # recurrent h @ W_hh (2 layers)
        + 2 * T * Np * HIDDEN * 3 * HIDDEN           # fused QKV proj
        + 2 * 2 * Np * T * T * HIDDEN                # scores + context
        + 2 * T * Np * HIDDEN * VOCAB)               # vocab projection
    transcendentals = int(2 * T * (2 * Np * 4 * HIDDEN + Np * HIDDEN)
                          + Np * T * T + Np * T)
    bytes_accessed = int(sum(int(np.prod(a.shape)) for a in args) * 4
                         + Np * T * VOCAB * 4)

    out = pl.pallas_call(
        decoder_kernel,
        out_shape=jax.ShapeDtypeStruct((Np, T, VOCAB), jnp.float32),
        in_specs=[pl.BlockSpec(memory_space=pltpu.MemorySpace.VMEM)] * len(args),
        out_specs=pl.BlockSpec(memory_space=pltpu.MemorySpace.VMEM),
        scratch_shapes=[pltpu.VMEM((T, Np, HIDDEN), jnp.float32),   # layer-1 out (TM)
                        pltpu.VMEM((Np, T, HIDDEN), jnp.float32)],  # layer-2 out (BM)
        cost_estimate=pl.CostEstimate(flops=flops,
                                      transcendentals=transcendentals,
                                      bytes_accessed=bytes_accessed),
    )(*args)
    return out[:N]

# TODO(synk): the evaluation branch (option scoring: log-softmax + gather over
# target tokens + length-normalized sum) is not implemented here; only the
# training/stage-1 path is kernelized.
# TODO(synk): at real VisDial sizes (V~11k, N in the hundreds) this grid-less,
# fully-VMEM-resident design must be replaced by a grid over N with a tiled
# vocab projection (mandatory on v7x's 64 MiB VMEM / 2 TCs).


def reference_forward(params, encoder_output, ans_in):
    """Pure-JAX reference mirroring the PyTorch training branch."""
    B, R, T = ans_in.shape
    N = B * R
    H = HIDDEN
    tokens = ans_in.reshape(N, T)
    x = jnp.take(params['embedding'], tokens, axis=0)         # (N, T, E)
    h0 = encoder_output.reshape(N, H)

    def lstm_layer(x, wihT, whhT, b):
        def step(carry, x_t):
            h, c = carry
            gates = x_t @ wihT + h @ whhT + b
            i = jax.nn.sigmoid(gates[:, :H])
            f = jax.nn.sigmoid(gates[:, H:2 * H])
            g = jnp.tanh(gates[:, 2 * H:3 * H])
            o = jax.nn.sigmoid(gates[:, 3 * H:])
            c = f * c + i * g
            h = o * jnp.tanh(c)
            return (h, c), h
        (_, _), hs = lax.scan(step, (h0, jnp.zeros_like(h0)),
                              jnp.transpose(x, (1, 0, 2)))
        return jnp.transpose(hs, (1, 0, 2))

    out = lstm_layer(x, params['w_ih0'].T, params['w_hh0'].T,
                     params['b_ih0'] + params['b_hh0'])
    out = lstm_layer(out, params['w_ih1'].T, params['w_hh1'].T,
                     params['b_ih1'] + params['b_hh1'])

    q = out @ params['w_q'].T + params['b_q']
    k = out @ params['w_k'].T + params['b_k']
    v = out @ params['w_v'].T + params['b_v']
    scores = jnp.einsum('ntg,nsg->nts', q, k)
    mask = jnp.tril(jnp.ones((T, T), jnp.float32))
    scores = scores * mask - NEG * (1.0 - mask)
    prob = jax.nn.softmax(scores, axis=-1)
    ctx = jnp.einsum('nts,nsh->nth', prob, v)
    return ctx @ params['w_out'].T + params['b_out']


if __name__ == "__main__":
    key = jax.random.PRNGKey(0)
    pkey, tkey, ekey = jax.random.split(key, 3)

    params = init_params(pkey)
    ans_in = jax.random.randint(tkey, (BATCH, ROUNDS, MAX_SEQ), 0, VOCAB,
                                dtype=jnp.int32)
    encoder_output = jax.random.uniform(ekey, (BATCH, ROUNDS, HIDDEN),
                                        jnp.float32, -0.5, 0.5)

    out = generative_decoder_forward(params, encoder_output, ans_in)
    out = jax.block_until_ready(out)

    ref = reference_forward(params, encoder_output, ans_in)
    # tolerance accounts for the approximate EUP reciprocal in the softmax.
    np.testing.assert_allclose(np.asarray(out), np.asarray(ref),
                               rtol=5e-3, atol=5e-3)
    print("KERNEL_OK")
</pallas_src>

<mosaic_0001>
module attributes {stable_mosaic.version = 11 : i64} {
  func.func @decoder_kernel(%arg0: memref<8x8x32xf32, #tpu.memory_space<vmem>>, %arg1: memref<8x32xf32, #tpu.memory_space<vmem>>, %arg2: memref<32x128xf32, #tpu.memory_space<vmem>>, %arg3: memref<32x128xf32, #tpu.memory_space<vmem>>, %arg4: memref<1x128xf32, #tpu.memory_space<vmem>>, %arg5: memref<32x128xf32, #tpu.memory_space<vmem>>, %arg6: memref<32x128xf32, #tpu.memory_space<vmem>>, %arg7: memref<1x128xf32, #tpu.memory_space<vmem>>, %arg8: memref<32x96xf32, #tpu.memory_space<vmem>>, %arg9: memref<1x96xf32, #tpu.memory_space<vmem>>, %arg10: memref<32x128xf32, #tpu.memory_space<vmem>>, %arg11: memref<1x128xf32, #tpu.memory_space<vmem>>, %arg12: memref<8x8xf32, #tpu.memory_space<vmem>>, %arg13: memref<8x8x128xf32, #tpu.memory_space<vmem>>, %arg14: memref<8x8x32xf32, #tpu.memory_space<vmem>>, %arg15: memref<8x8x32xf32, #tpu.memory_space<vmem>>) attributes {dimension_semantics = [], scalar_prefetch = 0 : i64, scratch_operands = 2 : i64, tpu.core_type = #tpu.core_type<tc>} {
    %c0 = arith.constant 0 : index
    %c0_0 = arith.constant 0 : index
    %0 = vector.load %arg1[%c0, %c0_0] : memref<8x32xf32, #tpu.memory_space<vmem>>, vector<8x32xf32>
    %cst = arith.constant 0.000000e+00 : f32
    %1 = vector.broadcast %cst : f32 to vector<8x32xf32>
    %c0_1 = arith.constant 0 : index
    %c0_2 = arith.constant 0 : index
    %c0_3 = arith.constant 0 : index
    %2 = vector.load %arg0[%c0_1, %c0_2, %c0_3] : memref<8x8x32xf32, #tpu.memory_space<vmem>>, vector<8x8x32xf32>
    %3 = vector.shape_cast %2 : vector<8x8x32xf32> to vector<64x32xf32>
    %c0_4 = arith.constant 0 : index
    %c0_5 = arith.constant 0 : index
    %4 = vector.load %arg2[%c0_4, %c0_5] : memref<32x128xf32, #tpu.memory_space<vmem>>, vector<32x128xf32>
    %cst_6 = arith.constant dense<0.000000e+00> : vector<64x128xf32>
    %5 = tpu.matmul %3, %4, %cst_6 {dimension_numbers = #tpu.dot_dimension_numbers<[1], [0], [0], [1], [0, 0, 1, 1], [], []>} : vector<64x32xf32>, vector<32x128xf32>, vector<64x128xf32> -> vector<64x128xf32>
    %c0_7 = arith.constant 0 : index
    %c0_8 = arith.constant 0 : index
    %6 = vector.load %arg4[%c0_7, %c0_8] : memref<1x128xf32, #tpu.memory_space<vmem>>, vector<1x128xf32>
    %7 = vector.broadcast %6 : vector<1x128xf32> to vector<64x128xf32>
    %8 = arith.addf %5, %7 : vector<64x128xf32>
    %9 = vector.shape_cast %8 : vector<64x128xf32> to vector<8x8x128xf32>
    %c0_9 = arith.constant 0 : index
    %c0_10 = arith.constant 0 : index
    %10 = vector.load %arg3[%c0_9, %c0_10] : memref<32x128xf32, #tpu.memory_space<vmem>>, vector<32x128xf32>
    %11 = vector.extract_strided_slice %9 {offsets = [0, 0, 0], sizes = [1, 8, 128], strides = [1, 1, 1]} : vector<8x8x128xf32> to vector<1x8x128xf32>
    %12 = vector.shape_cast %11 : vector<1x8x128xf32> to vector<8x128xf32>
    %cst_11 = arith.constant dense<0.000000e+00> : vector<8x128xf32>
    %13 = tpu.matmul %0, %10, %cst_11 {dimension_numbers = #tpu.dot_dimension_numbers<[1], [0], [0], [1], [0, 0, 1, 1], [], []>} : vector<8x32xf32>, vector<32x128xf32>, vector<8x128xf32> -> vector<8x128xf32>
    %14 = arith.addf %12, %13 : vector<8x128xf32>
    %15 = arith.negf %14 : vector<8x128xf32>
    %16 = math.exp %15 : vector<8x128xf32>
    %cst_12 = arith.constant 1.000000e+00 : f32
    %17 = vector.broadcast %cst_12 : f32 to vector<8x128xf32>
    %18 = arith.addf %17, %16 : vector<8x128xf32>
    %19 = arith.divf %17, %18 : vector<8x128xf32>
    %20 = math.tanh %14 : vector<8x128xf32>
    %21 = vector.extract_strided_slice %19 {offsets = [0, 0], sizes = [8, 32], strides = [1, 1]} : vector<8x128xf32> to vector<8x32xf32>
    %22 = vector.extract_strided_slice %19 {offsets = [0, 32], sizes = [8, 32], strides = [1, 1]} : vector<8x128xf32> to vector<8x32xf32>
    %23 = vector.extract_strided_slice %20 {offsets = [0, 64], sizes = [8, 32], strides = [1, 1]} : vector<8x128xf32> to vector<8x32xf32>
    %24 = vector.extract_strided_slice %19 {offsets = [0, 96], sizes = [8, 32], strides = [1, 1]} : vector<8x128xf32> to vector<8x32xf32>
    %25 = arith.mulf %22, %1 : vector<8x32xf32>
    %26 = arith.mulf %21, %23 : vector<8x32xf32>
    %27 = arith.addf %25, %26 : vector<8x32xf32>
    %28 = math.tanh %27 : vector<8x32xf32>
    %29 = arith.mulf %24, %28 : vector<8x32xf32>
    %c0_13 = arith.constant 0 : index
    %c0_14 = arith.constant 0 : index
    %c0_15 = arith.constant 0 : index
    %30 = vector.load %arg14[%c0_13, %c0_14, %c0_15] : memref<8x8x32xf32, #tpu.memory_space<vmem>>, vector<1x8x32xf32>
    %31 = vector.shape_cast %30 : vector<1x8x32xf32> to vector<8x32xf32>
    %32 = vector.shape_cast %29 : vector<8x32xf32> to vector<1x8x32xf32>
    tpu.vector_store %arg14[%c0_13, %c0_14, %c0_15], %32 {strides = array<i32>} : memref<8x8x32xf32, #tpu.memory_space<vmem>>, vector<1x8x32xf32>,
    %33 = vector.extract_strided_slice %9 {offsets = [1, 0, 0], sizes = [1, 8, 128], strides = [1, 1, 1]} : vector<8x8x128xf32> to vector<1x8x128xf32>
    %34 = vector.shape_cast %33 : vector<1x8x128xf32> to vector<8x128xf32>
    %cst_16 = arith.constant dense<0.000000e+00> : vector<8x128xf32>
    %35 = tpu.matmul %29, %10, %cst_16 {dimension_numbers = #tpu.dot_dimension_numbers<[1], [0], [0], [1], [0, 0, 1, 1], [], []>} : vector<8x32xf32>, vector<32x128xf32>, vector<8x128xf32> -> vector<8x128xf32>
    %36 = arith.addf %34, %35 : vector<8x128xf32>
    %37 = arith.negf %36 : vector<8x128xf32>
    %38 = math.exp %37 : vector<8x128xf32>
    %cst_17 = arith.constant 1.000000e+00 : f32
    %39 = vector.broadcast %cst_17 : f32 to vector<8x128xf32>
    %40 = arith.addf %39, %38 : vector<8x128xf32>
    %41 = arith.divf %39, %40 : vector<8x128xf32>
    %42 = math.tanh %36 : vector<8x128xf32>
    %43 = vector.extract_strided_slice %41 {offsets = [0, 0], sizes = [8, 32], strides = [1, 1]} : vector<8x128xf32> to vector<8x32xf32>
    %44 = vector.extract_strided_slice %41 {offsets = [0, 32], sizes = [8, 32], strides = [1, 1]} : vector<8x128xf32> to vector<8x32xf32>
    %45 = vector.extract_strided_slice %42 {offsets = [0, 64], sizes = [8, 32], strides = [1, 1]} : vector<8x128xf32> to vector<8x32xf32>
    %46 = vector.extract_strided_slice %41 {offsets = [0, 96], sizes = [8, 32], strides = [1, 1]} : vector<8x128xf32> to vector<8x32xf32>
    %47 = arith.mulf %44, %27 : vector<8x32xf32>
    %48 = arith.mulf %43, %45 : vector<8x32xf32>
    %49 = arith.addf %47, %48 : vector<8x32xf32>
    %50 = math.tanh %49 : vector<8x32xf32>
    %51 = arith.mulf %46, %50 : vector<8x32xf32>
    %c1 = arith.constant 1 : index
    %c0_18 = arith.constant 0 : index
    %c0_19 = arith.constant 0 : index
    %52 = vector.load %arg14[%c1, %c0_18, %c0_19] : memref<8x8x32xf32, #tpu.memory_space<vmem>>, vector<1x8x32xf32>
    %53 = vector.shape_cast %52 : vector<1x8x32xf32> to vector<8x32xf32>
    %54 = vector.shape_cast %51 : vector<8x32xf32> to vector<1x8x32xf32>
    tpu.vector_store %arg14[%c1, %c0_18, %c0_19], %54 {strides = array<i32>} : memref<8x8x32xf32, #tpu.memory_space<vmem>>, vector<1x8x32xf32>,
    %55 = vector.extract_strided_slice %9 {offsets = [2, 0, 0], sizes = [1, 8, 128], strides = [1, 1, 1]} : vector<8x8x128xf32> to vector<1x8x128xf32>
    %56 = vector.shape_cast %55 : vector<1x8x128xf32> to vector<8x128xf32>
    %cst_20 = arith.constant dense<0.000000e+00> : vector<8x128xf32>
    %57 = tpu.matmul %51, %10, %cst_20 {dimension_numbers = #tpu.dot_dimension_numbers<[1], [0], [0], [1], [0, 0, 1, 1], [], []>} : vector<8x32xf32>, vector<32x128xf32>, vector<8x128xf32> -> vector<8x128xf32>
    %58 = arith.addf %56, %57 : vector<8x128xf32>
    %59 = arith.negf %58 : vector<8x128xf32>
    %60 = math.exp %59 : vector<8x128xf32>
    %cst_21 = arith.constant 1.000000e+00 : f32
    %61 = vector.broadcast %cst_21 : f32 to vector<8x128xf32>
    %62 = arith.addf %61, %60 : vector<8x128xf32>
    %63 = arith.divf %61, %62 : vector<8x128xf32>
    %64 = math.tanh %58 : vector<8x128xf32>
    %65 = vector.extract_strided_slice %63 {offsets = [0, 0], sizes = [8, 32], strides = [1, 1]} : vector<8x128xf32> to vector<8x32xf32>
    %66 = vector.extract_strided_slice %63 {offsets = [0, 32], sizes = [8, 32], strides = [1, 1]} : vector<8x128xf32> to vector<8x32xf32>
    %67 = vector.extract_strided_slice %64 {offsets = [0, 64], sizes = [8, 32], strides = [1, 1]} : vector<8x128xf32> to vector<8x32xf32>
    %68 = vector.extract_strided_slice %63 {offsets = [0, 96], sizes = [8, 32], strides = [1, 1]} : vector<8x128xf32> to vector<8x32xf32>
    %69 = arith.mulf %66, %49 : vector<8x32xf32>
    %70 = arith.mulf %65, %67 : vector<8x32xf32>
    %71 = arith.addf %69, %70 : vector<8x32xf32>
    %72 = math.tanh %71 : vector<8x32xf32>
    %73 = arith.mulf %68, %72 : vector<8x32xf32>
    %c2 = arith.constant 2 : index
    %c0_22 = arith.constant 0 : index
    %c0_23 = arith.constant 0 : index
    %74 = vector.load %arg14[%c2, %c0_22, %c0_23] : memref<8x8x32xf32, #tpu.memory_space<vmem>>, vector<1x8x32xf32>
    %75 = vector.shape_cast %74 : vector<1x8x32xf32> to vector<8x32xf32>
    %76 = vector.shape_cast %73 : vector<8x32xf32> to vector<1x8x32xf32>
    tpu.vector_store %arg14[%c2, %c0_22, %c0_23], %76 {strides = array<i32>} : memref<8x8x32xf32, #tpu.memory_space<vmem>>, vector<1x8x32xf32>,
    %77 = vector.extract_strided_slice %9 {offsets = [3, 0, 0], sizes = [1, 8, 128], strides = [1, 1, 1]} : vector<8x8x128xf32> to vector<1x8x128xf32>
    %78 = vector.shape_cast %77 : vector<1x8x128xf32> to vector<8x128xf32>
    %cst_24 = arith.constant dense<0.000000e+00> : vector<8x128xf32>
    %79 = tpu.matmul %73, %10, %cst_24 {dimension_numbers = #tpu.dot_dimension_numbers<[1], [0], [0], [1], [0, 0, 1, 1], [], []>} : vector<8x32xf32>, vector<32x128xf32>, vector<8x128xf32> -> vector<8x128xf32>
    %80 = arith.addf %78, %79 : vector<8x128xf32>
    %81 = arith.negf %80 : vector<8x128xf32>
    %82 = math.exp %81 : vector<8x128xf32>
    %cst_25 = arith.constant 1.000000e+00 : f32
    %83 = vector.broadcast %cst_25 : f32 to vector<8x128xf32>
    %84 = arith.addf %83, %82 : vector<8x128xf32>
    %85 = arith.divf %83, %84 : vector<8x128xf32>
    %86 = math.tanh %80 : vector<8x128xf32>
    %87 = vector.extract_strided_slice %85 {offsets = [0, 0], sizes = [8, 32], strides = [1, 1]} : vector<8x128xf32> to vector<8x32xf32>
    %88 = vector.extract_strided_slice %85 {offsets = [0, 32], sizes = [8, 32], strides = [1, 1]} : vector<8x128xf32> to vector<8x32xf32>
    %89 = vector.extract_strided_slice %86 {offsets = [0, 64], sizes = [8, 32], strides = [1, 1]} : vector<8x128xf32> to vector<8x32xf32>
    %90 = vector.extract_strided_slice %85 {offsets = [0, 96], sizes = [8, 32], strides = [1, 1]} : vector<8x128xf32> to vector<8x32xf32>
    %91 = arith.mulf %88, %71 : vector<8x32xf32>
    %92 = arith.mulf %87, %89 : vector<8x32xf32>
    %93 = arith.addf %91, %92 : vector<8x32xf32>
    %94 = math.tanh %93 : vector<8x32xf32>
    %95 = arith.mulf %90, %94 : vector<8x32xf32>
    %c3 = arith.constant 3 : index
    %c0_26 = arith.constant 0 : index
    %c0_27 = arith.constant 0 : index
    %96 = vector.load %arg14[%c3, %c0_26, %c0_27] : memref<8x8x32xf32, #tpu.memory_space<vmem>>, vector<1x8x32xf32>
    %97 = vector.shape_cast %96 : vector<1x8x32xf32> to vector<8x32xf32>
    %98 = vector.shape_cast %95 : vector<8x32xf32> to vector<1x8x32xf32>
    tpu.vector_store %arg14[%c3, %c0_26, %c0_27], %98 {strides = array<i32>} : memref<8x8x32xf32, #tpu.memory_space<vmem>>, vector<1x8x32xf32>,
    %99 = vector.extract_strided_slice %9 {offsets = [4, 0, 0], sizes = [1, 8, 128], strides = [1, 1, 1]} : vector<8x8x128xf32> to vector<1x8x128xf32>
    %100 = vector.shape_cast %99 : vector<1x8x128xf32> to vector<8x128xf32>
    %cst_28 = arith.constant dense<0.000000e+00> : vector<8x128xf32>
    %101 = tpu.matmul %95, %10, %cst_28 {dimension_numbers = #tpu.dot_dimension_numbers<[1], [0], [0], [1], [0, 0, 1, 1], [], []>} : vector<8x32xf32>, vector<32x128xf32>, vector<8x128xf32> -> vector<8x128xf32>
    %102 = arith.addf %100, %101 : vector<8x128xf32>
    %103 = arith.negf %102 : vector<8x128xf32>
    %104 = math.exp %103 : vector<8x128xf32>
    %cst_29 = arith.constant 1.000000e+00 : f32
    %105 = vector.broadcast %cst_29 : f32 to vector<8x128xf32>
    %106 = arith.addf %105, %104 : vector<8x128xf32>
    %107 = arith.divf %105, %106 : vector<8x128xf32>
    %108 = math.tanh %102 : vector<8x128xf32>
    %109 = vector.extract_strided_slice %107 {offsets = [0, 0], sizes = [8, 32], strides = [1, 1]} : vector<8x128xf32> to vector<8x32xf32>
    %110 = vector.extract_strided_slice %107 {offsets = [0, 32], sizes = [8, 32], strides = [1, 1]} : vector<8x128xf32> to vector<8x32xf32>
    %111 = vector.extract_strided_slice %108 {offsets = [0, 64], sizes = [8, 32], strides = [1, 1]} : vector<8x128xf32> to vector<8x32xf32>
    %112 = vector.extract_strided_slice %107 {offsets = [0, 96], sizes = [8, 32], strides = [1, 1]} : vector<8x128xf32> to vector<8x32xf32>
    %113 = arith.mulf %110, %93 : vector<8x32xf32>
    %114 = arith.mulf %109, %111 : vector<8x32xf32>
    %115 = arith.addf %113, %114 : vector<8x32xf32>
    %116 = math.tanh %115 : vector<8x32xf32>
    %117 = arith.mulf %112, %116 : vector<8x32xf32>
    %c4 = arith.constant 4 : index
    %c0_30 = arith.constant 0 : index
    %c0_31 = arith.constant 0 : index
    %118 = vector.load %arg14[%c4, %c0_30, %c0_31] : memref<8x8x32xf32, #tpu.memory_space<vmem>>, vector<1x8x32xf32>
    %119 = vector.shape_cast %118 : vector<1x8x32xf32> to vector<8x32xf32>
    %120 = vector.shape_cast %117 : vector<8x32xf32> to vector<1x8x32xf32>
    tpu.vector_store %arg14[%c4, %c0_30, %c0_31], %120 {strides = array<i32>} : memref<8x8x32xf32, #tpu.memory_space<vmem>>, vector<1x8x32xf32>,
    %121 = vector.extract_strided_slice %9 {offsets = [5, 0, 0], sizes = [1, 8, 128], strides = [1, 1, 1]} : vector<8x8x128xf32> to vector<1x8x128xf32>
    %122 = vector.shape_cast %121 : vector<1x8x128xf32> to vector<8x128xf32>
    %cst_32 = arith.constant dense<0.000000e+00> : vector<8x128xf32>
    %123 = tpu.matmul %117, %10, %cst_32 {dimension_numbers = #tpu.dot_dimension_numbers<[1], [0], [0], [1], [0, 0, 1, 1], [], []>} : vector<8x32xf32>, vector<32x128xf32>, vector<8x128xf32> -> vector<8x128xf32>
    %124 = arith.addf %122, %123 : vector<8x128xf32>
    %125 = arith.negf %124 : vector<8x128xf32>
    %126 = math.exp %125 : vector<8x128xf32>
    %cst_33 = arith.constant 1.000000e+00 : f32
    %127 = vector.broadcast %cst_33 : f32 to vector<8x128xf32>
    %128 = arith.addf %127, %126 : vector<8x128xf32>
    %129 = arith.divf %127, %128 : vector<8x128xf32>
    %130 = math.tanh %124 : vector<8x128xf32>
    %131 = vector.extract_strided_slice %129 {offsets = [0, 0], sizes = [8, 32], strides = [1, 1]} : vector<8x128xf32> to vector<8x32xf32>
    %132 = vector.extract_strided_slice %129 {offsets = [0, 32], sizes = [8, 32], strides = [1, 1]} : vector<8x128xf32> to vector<8x32xf32>
    %133 = vector.extract_strided_slice %130 {offsets = [0, 64], sizes = [8, 32], strides = [1, 1]} : vector<8x128xf32> to vector<8x32xf32>
    %134 = vector.extract_strided_slice %129 {offsets = [0, 96], sizes = [8, 32], strides = [1, 1]} : vector<8x128xf32> to vector<8x32xf32>
    %135 = arith.mulf %132, %115 : vector<8x32xf32>
    %136 = arith.mulf %131, %133 : vector<8x32xf32>
    %137 = arith.addf %135, %136 : vector<8x32xf32>
    %138 = math.tanh %137 : vector<8x32xf32>
    %139 = arith.mulf %134, %138 : vector<8x32xf32>
    %c5 = arith.constant 5 : index
    %c0_34 = arith.constant 0 : index
    %c0_35 = arith.constant 0 : index
    %140 = vector.load %arg14[%c5, %c0_34, %c0_35] : memref<8x8x32xf32, #tpu.memory_space<vmem>>, vector<1x8x32xf32>
    %141 = vector.shape_cast %140 : vector<1x8x32xf32> to vector<8x32xf32>
    %142 = vector.shape_cast %139 : vector<8x32xf32> to vector<1x8x32xf32>
    tpu.vector_store %arg14[%c5, %c0_34, %c0_35], %142 {strides = array<i32>} : memref<8x8x32xf32, #tpu.memory_space<vmem>>, vector<1x8x32xf32>,
    %143 = vector.extract_strided_slice %9 {offsets = [6, 0, 0], sizes = [1, 8, 128], strides = [1, 1, 1]} : vector<8x8x128xf32> to vector<1x8x128xf32>
    %144 = vector.shape_cast %143 : vector<1x8x128xf32> to vector<8x128xf32>
    %cst_36 = arith.constant dense<0.000000e+00> : vector<8x128xf32>
    %145 = tpu.matmul %139, %10, %cst_36 {dimension_numbers = #tpu.dot_dimension_numbers<[1], [0], [0], [1], [0, 0, 1, 1], [], []>} : vector<8x32xf32>, vector<32x128xf32>, vector<8x128xf32> -> vector<8x128xf32>
    %146 = arith.addf %144, %145 : vector<8x128xf32>
    %147 = arith.negf %146 : vector<8x128xf32>
    %148 = math.exp %147 : vector<8x128xf32>
    %cst_37 = arith.constant 1.000000e+00 : f32
    %149 = vector.broadcast %cst_37 : f32 to vector<8x128xf32>
    %150 = arith.addf %149, %148 : vector<8x128xf32>
    %151 = arith.divf %149, %150 : vector<8x128xf32>
    %152 = math.tanh %146 : vector<8x128xf32>
    %153 = vector.extract_strided_slice %151 {offsets = [0, 0], sizes = [8, 32], strides = [1, 1]} : vector<8x128xf32> to vector<8x32xf32>
    %154 = vector.extract_strided_slice %151 {offsets = [0, 32], sizes = [8, 32], strides = [1, 1]} : vector<8x128xf32> to vector<8x32xf32>
    %155 = vector.extract_strided_slice %152 {offsets = [0, 64], sizes = [8, 32], strides = [1, 1]} : vector<8x128xf32> to vector<8x32xf32>
    %156 = vector.extract_strided_slice %151 {offsets = [0, 96], sizes = [8, 32], strides = [1, 1]} : vector<8x128xf32> to vector<8x32xf32>
    %157 = arith.mulf %154, %137 : vector<8x32xf32>
    %158 = arith.mulf %153, %155 : vector<8x32xf32>
    %159 = arith.addf %157, %158 : vector<8x32xf32>
    %160 = math.tanh %159 : vector<8x32xf32>
    %161 = arith.mulf %156, %160 : vector<8x32xf32>
    %c6 = arith.constant 6 : index
    %c0_38 = arith.constant 0 : index
    %c0_39 = arith.constant 0 : index
    %162 = vector.load %arg14[%c6, %c0_38, %c0_39] : memref<8x8x32xf32, #tpu.memory_space<vmem>>, vector<1x8x32xf32>
    %163 = vector.shape_cast %162 : vector<1x8x32xf32> to vector<8x32xf32>
    %164 = vector.shape_cast %161 : vector<8x32xf32> to vector<1x8x32xf32>
    tpu.vector_store %arg14[%c6, %c0_38, %c0_39], %164 {strides = array<i32>} : memref<8x8x32xf32, #tpu.memory_space<vmem>>, vector<1x8x32xf32>,
    %165 = vector.extract_strided_slice %9 {offsets = [7, 0, 0], sizes = [1, 8, 128], strides = [1, 1, 1]} : vector<8x8x128xf32> to vector<1x8x128xf32>
    %166 = vector.shape_cast %165 : vector<1x8x128xf32> to vector<8x128xf32>
    %cst_40 = arith.constant dense<0.000000e+00> : vector<8x128xf32>
    %167 = tpu.matmul %161, %10, %cst_40 {dimension_numbers = #tpu.dot_dimension_numbers<[1], [0], [0], [1], [0, 0, 1, 1], [], []>} : vector<8x32xf32>, vector<32x128xf32>, vector<8x128xf32> -> vector<8x128xf32>
    %168 = arith.addf %166, %167 : vector<8x128xf32>
    %169 = arith.negf %168 : vector<8x128xf32>
    %170 = math.exp %169 : vector<8x128xf32>
    %cst_41 = arith.constant 1.000000e+00 : f32
    %171 = vector.broadcast %cst_41 : f32 to vector<8x128xf32>
    %172 = arith.addf %171, %170 : vector<8x128xf32>
    %173 = arith.divf %171, %172 : vector<8x128xf32>
    %174 = math.tanh %168 : vector<8x128xf32>
    %175 = vector.extract_strided_slice %173 {offsets = [0, 0], sizes = [8, 32], strides = [1, 1]} : vector<8x128xf32> to vector<8x32xf32>
    %176 = vector.extract_strided_slice %173 {offsets = [0, 32], sizes = [8, 32], strides = [1, 1]} : vector<8x128xf32> to vector<8x32xf32>
    %177 = vector.extract_strided_slice %174 {offsets = [0, 64], sizes = [8, 32], strides = [1, 1]} : vector<8x128xf32> to vector<8x32xf32>
    %178 = vector.extract_strided_slice %173 {offsets = [0, 96], sizes = [8, 32], strides = [1, 1]} : vector<8x128xf32> to vector<8x32xf32>
    %179 = arith.mulf %176, %159 : vector<8x32xf32>
    %180 = arith.mulf %175, %177 : vector<8x32xf32>
    %181 = arith.addf %179, %180 : vector<8x32xf32>
    %182 = math.tanh %181 : vector<8x32xf32>
    %183 = arith.mulf %178, %182 : vector<8x32xf32>
    %c7 = arith.constant 7 : index
    %c0_42 = arith.constant 0 : index
    %c0_43 = arith.constant 0 : index
    %184 = vector.load %arg14[%c7, %c0_42, %c0_43] : memref<8x8x32xf32, #tpu.memory_space<vmem>>, vector<1x8x32xf32>
    %185 = vector.shape_cast %184 : vector<1x8x32xf32> to vector<8x32xf32>
    %186 = vector.shape_cast %183 : vector<8x32xf32> to vector<1x8x32xf32>
    tpu.vector_store %arg14[%c7, %c0_42, %c0_43], %186 {strides = array<i32>} : memref<8x8x32xf32, #tpu.memory_space<vmem>>, vector<1x8x32xf32>,
    %c0_44 = arith.constant 0 : index
    %c0_45 = arith.constant 0 : index
    %c0_46 = arith.constant 0 : index
    %187 = vector.load %arg14[%c0_44, %c0_45, %c0_46] : memref<8x8x32xf32, #tpu.memory_space<vmem>>, vector<8x8x32xf32>
    %188 = vector.shape_cast %187 : vector<8x8x32xf32> to vector<64x32xf32>
    %c0_47 = arith.constant 0 : index
    %c0_48 = arith.constant 0 : index
    %189 = vector.load %arg5[%c0_47, %c0_48] : memref<32x128xf32, #tpu.memory_space<vmem>>, vector<32x128xf32>
    %cst_49 = arith.constant dense<0.000000e+00> : vector<64x128xf32>
    %190 = tpu.matmul %188, %189, %cst_49 {dimension_numbers = #tpu.dot_dimension_numbers<[1], [0], [0], [1], [0, 0, 1, 1], [], []>} : vector<64x32xf32>, vector<32x128xf32>, vector<64x128xf32> -> vector<64x128xf32>
    %c0_50 = arith.constant 0 : index
    %c0_51 = arith.constant 0 : index
    %191 = vector.load %arg7[%c0_50, %c0_51] : memref<1x128xf32, #tpu.memory_space<vmem>>, vector<1x128xf32>
    %192 = vector.broadcast %191 : vector<1x128xf32> to vector<64x128xf32>
    %193 = arith.addf %190, %192 : vector<64x128xf32>
    %194 = vector.shape_cast %193 : vector<64x128xf32> to vector<8x8x128xf32>
    %c0_52 = arith.constant 0 : index
    %c0_53 = arith.constant 0 : index
    %195 = vector.load %arg6[%c0_52, %c0_53] : memref<32x128xf32, #tpu.memory_space<vmem>>, vector<32x128xf32>
    %196 = vector.extract_strided_slice %194 {offsets = [0, 0, 0], sizes = [1, 8, 128], strides = [1, 1, 1]} : vector<8x8x128xf32> to vector<1x8x128xf32>
    %197 = vector.shape_cast %196 : vector<1x8x128xf32> to vector<8x128xf32>
    %cst_54 = arith.constant dense<0.000000e+00> : vector<8x128xf32>
    %198 = tpu.matmul %0, %195, %cst_54 {dimension_numbers = #tpu.dot_dimension_numbers<[1], [0], [0], [1], [0, 0, 1, 1], [], []>} : vector<8x32xf32>, vector<32x128xf32>, vector<8x128xf32> -> vector<8x128xf32>
    %199 = arith.addf %197, %198 : vector<8x128xf32>
    %200 = arith.negf %199 : vector<8x128xf32>
    %201 = math.exp %200 : vector<8x128xf32>
    %cst_55 = arith.constant 1.000000e+00 : f32
    %202 = vector.broadcast %cst_55 : f32 to vector<8x128xf32>
    %203 = arith.addf %202, %201 : vector<8x128xf32>
    %204 = arith.divf %202, %203 : vector<8x128xf32>
    %205 = math.tanh %199 : vector<8x128xf32>
    %206 = vector.extract_strided_slice %204 {offsets = [0, 0], sizes = [8, 32], strides = [1, 1]} : vector<8x128xf32> to vector<8x32xf32>
    %207 = vector.extract_strided_slice %204 {offsets = [0, 32], sizes = [8, 32], strides = [1, 1]} : vector<8x128xf32> to vector<8x32xf32>
    %208 = vector.extract_strided_slice %205 {offsets = [0, 64], sizes = [8, 32], strides = [1, 1]} : vector<8x128xf32> to vector<8x32xf32>
    %209 = vector.extract_strided_slice %204 {offsets = [0, 96], sizes = [8, 32], strides = [1, 1]} : vector<8x128xf32> to vector<8x32xf32>
    %210 = arith.mulf %207, %1 : vector<8x32xf32>
    %211 = arith.mulf %206, %208 : vector<8x32xf32>
    %212 = arith.addf %210, %211 : vector<8x32xf32>
    %213 = math.tanh %212 : vector<8x32xf32>
    %214 = arith.mulf %209, %213 : vector<8x32xf32>
    %c0_56 = arith.constant 0 : index
    %c0_57 = arith.constant 0 : index
    %c0_58 = arith.constant 0 : index
    %215 = vector.load %arg15[%c0_56, %c0_57, %c0_58] : memref<8x8x32xf32, #tpu.memory_space<vmem>>, vector<8x1x32xf32>
    %216 = vector.shape_cast %215 : vector<8x1x32xf32> to vector<8x32xf32>
    %217 = vector.shape_cast %214 : vector<8x32xf32> to vector<8x1x32xf32>
    tpu.vector_store %arg15[%c0_56, %c0_57, %c0_58], %217 {strides = array<i32>} : memref<8x8x32xf32, #tpu.memory_space<vmem>>, vector<8x1x32xf32>,
    %218 = vector.extract_strided_slice %194 {offsets = [1, 0, 0], sizes = [1, 8, 128], strides = [1, 1, 1]} : vector<8x8x128xf32> to vector<1x8x128xf32>
    %219 = vector.shape_cast %218 : vector<1x8x128xf32> to vector<8x128xf32>
    %cst_59 = arith.constant dense<0.000000e+00> : vector<8x128xf32>
    %220 = tpu.matmul %214, %195, %cst_59 {dimension_numbers = #tpu.dot_dimension_numbers<[1], [0], [0], [1], [0, 0, 1, 1], [], []>} : vector<8x32xf32>, vector<32x128xf32>, vector<8x128xf32> -> vector<8x128xf32>
    %221 = arith.addf %219, %220 : vector<8x128xf32>
    %222 = arith.negf %221 : vector<8x128xf32>
    %223 = math.exp %222 : vector<8x128xf32>
    %cst_60 = arith.constant 1.000000e+00 : f32
    %224 = vector.broadcast %cst_60 : f32 to vector<8x128xf32>
    %225 = arith.addf %224, %223 : vector<8x128xf32>
    %226 = arith.divf %224, %225 : vector<8x128xf32>
    %227 = math.tanh %221 : vector<8x128xf32>
    %228 = vector.extract_strided_slice %226 {offsets = [0, 0], sizes = [8, 32], strides = [1, 1]} : vector<8x128xf32> to vector<8x32xf32>
    %229 = vector.extract_strided_slice %226 {offsets = [0, 32], sizes = [8, 32], strides = [1, 1]} : vector<8x128xf32> to vector<8x32xf32>
    %230 = vector.extract_strided_slice %227 {offsets = [0, 64], sizes = [8, 32], strides = [1, 1]} : vector<8x128xf32> to vector<8x32xf32>
    %231 = vector.extract_strided_slice %226 {offsets = [0, 96], sizes = [8, 32], strides = [1, 1]} : vector<8x128xf32> to vector<8x32xf32>
    %232 = arith.mulf %229, %212 : vector<8x32xf32>
    %233 = arith.mulf %228, %230 : vector<8x32xf32>
    %234 = arith.addf %232, %233 : vector<8x32xf32>
    %235 = math.tanh %234 : vector<8x32xf32>
    %236 = arith.mulf %231, %235 : vector<8x32xf32>
    %c0_61 = arith.constant 0 : index
    %c1_62 = arith.constant 1 : index
    %c0_63 = arith.constant 0 : index
    %237 = vector.load %arg15[%c0_61, %c1_62, %c0_63] : memref<8x8x32xf32, #tpu.memory_space<vmem>>, vector<8x1x32xf32>
    %238 = vector.shape_cast %237 : vector<8x1x32xf32> to vector<8x32xf32>
    %239 = vector.shape_cast %236 : vector<8x32xf32> to vector<8x1x32xf32>
    tpu.vector_store %arg15[%c0_61, %c1_62, %c0_63], %239 {strides = array<i32>} : memref<8x8x32xf32, #tpu.memory_space<vmem>>, vector<8x1x32xf32>,
    %240 = vector.extract_strided_slice %194 {offsets = [2, 0, 0], sizes = [1, 8, 128], strides = [1, 1, 1]} : vector<8x8x128xf32> to vector<1x8x128xf32>
    %241 = vector.shape_cast %240 : vector<1x8x128xf32> to vector<8x128xf32>
    %cst_64 = arith.constant dense<0.000000e+00> : vector<8x128xf32>
    %242 = tpu.matmul %236, %195, %cst_64 {dimension_numbers = #tpu.dot_dimension_numbers<[1], [0], [0], [1], [0, 0, 1, 1], [], []>} : vector<8x32xf32>, vector<32x128xf32>, vector<8x128xf32> -> vector<8x128xf32>
    %243 = arith.addf %241, %242 : vector<8x128xf32>
    %244 = arith.negf %243 : vector<8x128xf32>
    %245 = math.exp %244 : vector<8x128xf32>
    %cst_65 = arith.constant 1.000000e+00 : f32
    %246 = vector.broadcast %cst_65 : f32 to vector<8x128xf32>
    %247 = arith.addf %246, %245 : vector<8x128xf32>
    %248 = arith.divf %246, %247 : vector<8x128xf32>
    %249 = math.tanh %243 : vector<8x128xf32>
    %250 = vector.extract_strided_slice %248 {offsets = [0, 0], sizes = [8, 32], strides = [1, 1]} : vector<8x128xf32> to vector<8x32xf32>
    %251 = vector.extract_strided_slice %248 {offsets = [0, 32], sizes = [8, 32], strides = [1, 1]} : vector<8x128xf32> to vector<8x32xf32>
    %252 = vector.extract_strided_slice %249 {offsets = [0, 64], sizes = [8, 32], strides = [1, 1]} : vector<8x128xf32> to vector<8x32xf32>
    %253 = vector.extract_strided_slice %248 {offsets = [0, 96], sizes = [8, 32], strides = [1, 1]} : vector<8x128xf32> to vector<8x32xf32>
    %254 = arith.mulf %251, %234 : vector<8x32xf32>
    %255 = arith.mulf %250, %252 : vector<8x32xf32>
    %256 = arith.addf %254, %255 : vector<8x32xf32>
    %257 = math.tanh %256 : vector<8x32xf32>
    %258 = arith.mulf %253, %257 : vector<8x32xf32>
    %c0_66 = arith.constant 0 : index
    %c2_67 = arith.constant 2 : index
    %c0_68 = arith.constant 0 : index
    %259 = vector.load %arg15[%c0_66, %c2_67, %c0_68] : memref<8x8x32xf32, #tpu.memory_space<vmem>>, vector<8x1x32xf32>
    %260 = vector.shape_cast %259 : vector<8x1x32xf32> to vector<8x32xf32>
    %261 = vector.shape_cast %258 : vector<8x32xf32> to vector<8x1x32xf32>
    tpu.vector_store %arg15[%c0_66, %c2_67, %c0_68], %261 {strides = array<i32>} : memref<8x8x32xf32, #tpu.memory_space<vmem>>, vector<8x1x32xf32>,
    %262 = vector.extract_strided_slice %194 {offsets = [3, 0, 0], sizes = [1, 8, 128], strides = [1, 1, 1]} : vector<8x8x128xf32> to vector<1x8x128xf32>
    %263 = vector.shape_cast %262 : vector<1x8x128xf32> to vector<8x128xf32>
    %cst_69 = arith.constant dense<0.000000e+00> : vector<8x128xf32>
    %264 = tpu.matmul %258, %195, %cst_69 {dimension_numbers = #tpu.dot_dimension_numbers<[1], [0], [0], [1], [0, 0, 1, 1], [], []>} : vector<8x32xf32>, vector<32x128xf32>, vector<8x128xf32> -> vector<8x128xf32>
    %265 = arith.addf %263, %264 : vector<8x128xf32>
    %266 = arith.negf %265 : vector<8x128xf32>
    %267 = math.exp %266 : vector<8x128xf32>
    %cst_70 = arith.constant 1.000000e+00 : f32
    %268 = vector.broadcast %cst_70 : f32 to vector<8x128xf32>
    %269 = arith.addf %268, %267 : vector<8x128xf32>
    %270 = arith.divf %268, %269 : vector<8x128xf32>
    %271 = math.tanh %265 : vector<8x128xf32>
    %272 = vector.extract_strided_slice %270 {offsets = [0, 0], sizes = [8, 32], strides = [1, 1]} : vector<8x128xf32> to vector<8x32xf32>
    %273 = vector.extract_strided_slice %270 {offsets = [0, 32], sizes = [8, 32], strides = [1, 1]} : vector<8x128xf32> to vector<8x32xf32>
    %274 = vector.extract_strided_slice %271 {offsets = [0, 64], sizes = [8, 32], strides = [1, 1]} : vector<8x128xf32> to vector<8x32xf32>
    %275 = vector.extract_strided_slice %270 {offsets = [0, 96], sizes = [8, 32], strides = [1, 1]} : vector<8x128xf32> to vector<8x32xf32>
    %276 = arith.mulf %273, %256 : vector<8x32xf32>
    %277 = arith.mulf %272, %274 : vector<8x32xf32>
    %278 = arith.addf %276, %277 : vector<8x32xf32>
    %279 = math.tanh %278 : vector<8x32xf32>
    %280 = arith.mulf %275, %279 : vector<8x32xf32>
    %c0_71 = arith.constant 0 : index
    %c3_72 = arith.constant 3 : index
    %c0_73 = arith.constant 0 : index
    %281 = vector.load %arg15[%c0_71, %c3_72, %c0_73] : memref<8x8x32xf32, #tpu.memory_space<vmem>>, vector<8x1x32xf32>
    %282 = vector.shape_cast %281 : vector<8x1x32xf32> to vector<8x32xf32>
    %283 = vector.shape_cast %280 : vector<8x32xf32> to vector<8x1x32xf32>
    tpu.vector_store %arg15[%c0_71, %c3_72, %c0_73], %283 {strides = array<i32>} : memref<8x8x32xf32, #tpu.memory_space<vmem>>, vector<8x1x32xf32>,
    %284 = vector.extract_strided_slice %194 {offsets = [4, 0, 0], sizes = [1, 8, 128], strides = [1, 1, 1]} : vector<8x8x128xf32> to vector<1x8x128xf32>
    %285 = vector.shape_cast %284 : vector<1x8x128xf32> to vector<8x128xf32>
    %cst_74 = arith.constant dense<0.000000e+00> : vector<8x128xf32>
    %286 = tpu.matmul %280, %195, %cst_74 {dimension_numbers = #tpu.dot_dimension_numbers<[1], [0], [0], [1], [0, 0, 1, 1], [], []>} : vector<8x32xf32>, vector<32x128xf32>, vector<8x128xf32> -> vector<8x128xf32>
    %287 = arith.addf %285, %286 : vector<8x128xf32>
    %288 = arith.negf %287 : vector<8x128xf32>
    %289 = math.exp %288 : vector<8x128xf32>
    %cst_75 = arith.constant 1.000000e+00 : f32
    %290 = vector.broadcast %cst_75 : f32 to vector<8x128xf32>
    %291 = arith.addf %290, %289 : vector<8x128xf32>
    %292 = arith.divf %290, %291 : vector<8x128xf32>
    %293 = math.tanh %287 : vector<8x128xf32>
    %294 = vector.extract_strided_slice %292 {offsets = [0, 0], sizes = [8, 32], strides = [1, 1]} : vector<8x128xf32> to vector<8x32xf32>
    %295 = vector.extract_strided_slice %292 {offsets = [0, 32], sizes = [8, 32], strides = [1, 1]} : vector<8x128xf32> to vector<8x32xf32>
    %296 = vector.extract_strided_slice %293 {offsets = [0, 64], sizes = [8, 32], strides = [1, 1]} : vector<8x128xf32> to vector<8x32xf32>
    %297 = vector.extract_strided_slice %292 {offsets = [0, 96], sizes = [8, 32], strides = [1, 1]} : vector<8x128xf32> to vector<8x32xf32>
    %298 = arith.mulf %295, %278 : vector<8x32xf32>
    %299 = arith.mulf %294, %296 : vector<8x32xf32>
    %300 = arith.addf %298, %299 : vector<8x32xf32>
    %301 = math.tanh %300 : vector<8x32xf32>
    %302 = arith.mulf %297, %301 : vector<8x32xf32>
    %c0_76 = arith.constant 0 : index
    %c4_77 = arith.constant 4 : index
    %c0_78 = arith.constant 0 : index
    %303 = vector.load %arg15[%c0_76, %c4_77, %c0_78] : memref<8x8x32xf32, #tpu.memory_space<vmem>>, vector<8x1x32xf32>
    %304 = vector.shape_cast %303 : vector<8x1x32xf32> to vector<8x32xf32>
    %305 = vector.shape_cast %302 : vector<8x32xf32> to vector<8x1x32xf32>
    tpu.vector_store %arg15[%c0_76, %c4_77, %c0_78], %305 {strides = array<i32>} : memref<8x8x32xf32, #tpu.memory_space<vmem>>, vector<8x1x32xf32>,
    %306 = vector.extract_strided_slice %194 {offsets = [5, 0, 0], sizes = [1, 8, 128], strides = [1, 1, 1]} : vector<8x8x128xf32> to vector<1x8x128xf32>
    %307 = vector.shape_cast %306 : vector<1x8x128xf32> to vector<8x128xf32>
    %cst_79 = arith.constant dense<0.000000e+00> : vector<8x128xf32>
    %308 = tpu.matmul %302, %195, %cst_79 {dimension_numbers = #tpu.dot_dimension_numbers<[1], [0], [0], [1], [0, 0, 1, 1], [], []>} : vector<8x32xf32>, vector<32x128xf32>, vector<8x128xf32> -> vector<8x128xf32>
    %309 = arith.addf %307, %308 : vector<8x128xf32>
    %310 = arith.negf %309 : vector<8x128xf32>
    %311 = math.exp %310 : vector<8x128xf32>
    %cst_80 = arith.constant 1.000000e+00 : f32
    %312 = vector.broadcast %cst_80 : f32 to vector<8x128xf32>
    %313 = arith.addf %312, %311 : vector<8x128xf32>
    %314 = arith.divf %312, %313 : vector<8x128xf32>
    %315 = math.tanh %309 : vector<8x128xf32>
    %316 = vector.extract_strided_slice %314 {offsets = [0, 0], sizes = [8, 32], strides = [1, 1]} : vector<8x128xf32> to vector<8x32xf32>
    %317 = vector.extract_strided_slice %314 {offsets = [0, 32], sizes = [8, 32], strides = [1, 1]} : vector<8x128xf32> to vector<8x32xf32>
    %318 = vector.extract_strided_slice %315 {offsets = [0, 64], sizes = [8, 32], strides = [1, 1]} : vector<8x128xf32> to vector<8x32xf32>
    %319 = vector.extract_strided_slice %314 {offsets = [0, 96], sizes = [8, 32], strides = [1, 1]} : vector<8x128xf32> to vector<8x32xf32>
    %320 = arith.mulf %317, %300 : vector<8x32xf32>
    %321 = arith.mulf %316, %318 : vector<8x32xf32>
    %322 = arith.addf %320, %321 : vector<8x32xf32>
    %323 = math.tanh %322 : vector<8x32xf32>
    %324 = arith.mulf %319, %323 : vector<8x32xf32>
    %c0_81 = arith.constant 0 : index
    %c5_82 = arith.constant 5 : index
    %c0_83 = arith.constant 0 : index
    %325 = vector.load %arg15[%c0_81, %c5_82, %c0_83] : memref<8x8x32xf32, #tpu.memory_space<vmem>>, vector<8x1x32xf32>
    %326 = vector.shape_cast %325 : vector<8x1x32xf32> to vector<8x32xf32>
    %327 = vector.shape_cast %324 : vector<8x32xf32> to vector<8x1x32xf32>
    tpu.vector_store %arg15[%c0_81, %c5_82, %c0_83], %327 {strides = array<i32>} : memref<8x8x32xf32, #tpu.memory_space<vmem>>, vector<8x1x32xf32>,
    %328 = vector.extract_strided_slice %194 {offsets = [6, 0, 0], sizes = [1, 8, 128], strides = [1, 1, 1]} : vector<8x8x128xf32> to vector<1x8x128xf32>
    %329 = vector.shape_cast %328 : vector<1x8x128xf32> to vector<8x128xf32>
    %cst_84 = arith.constant dense<0.000000e+00> : vector<8x128xf32>
    %330 = tpu.matmul %324, %195, %cst_84 {dimension_numbers = #tpu.dot_dimension_numbers<[1], [0], [0], [1], [0, 0, 1, 1], [], []>} : vector<8x32xf32>, vector<32x128xf32>, vector<8x128xf32> -> vector<8x128xf32>
    %331 = arith.addf %329, %330 : vector<8x128xf32>
    %332 = arith.negf %331 : vector<8x128xf32>
    %333 = math.exp %332 : vector<8x128xf32>
    %cst_85 = arith.constant 1.000000e+00 : f32
    %334 = vector.broadcast %cst_85 : f32 to vector<8x128xf32>
    %335 = arith.addf %334, %333 : vector<8x128xf32>
    %336 = arith.divf %334, %335 : vector<8x128xf32>
    %337 = math.tanh %331 : vector<8x128xf32>
    %338 = vector.extract_strided_slice %336 {offsets = [0, 0], sizes = [8, 32], strides = [1, 1]} : vector<8x128xf32> to vector<8x32xf32>
    %339 = vector.extract_strided_slice %336 {offsets = [0, 32], sizes = [8, 32], strides = [1, 1]} : vector<8x128xf32> to vector<8x32xf32>
    %340 = vector.extract_strided_slice %337 {offsets = [0, 64], sizes = [8, 32], strides = [1, 1]} : vector<8x128xf32> to vector<8x32xf32>
    %341 = vector.extract_strided_slice %336 {offsets = [0, 96], sizes = [8, 32], strides = [1, 1]} : vector<8x128xf32> to vector<8x32xf32>
    %342 = arith.mulf %339, %322 : vector<8x32xf32>
    %343 = arith.mulf %338, %340 : vector<8x32xf32>
    %344 = arith.addf %342, %343 : vector<8x32xf32>
    %345 = math.tanh %344 : vector<8x32xf32>
    %346 = arith.mulf %341, %345 : vector<8x32xf32>
    %c0_86 = arith.constant 0 : index
    %c6_87 = arith.constant 6 : index
    %c0_88 = arith.constant 0 : index
    %347 = vector.load %arg15[%c0_86, %c6_87, %c0_88] : memref<8x8x32xf32, #tpu.memory_space<vmem>>, vector<8x1x32xf32>
    %348 = vector.shape_cast %347 : vector<8x1x32xf32> to vector<8x32xf32>
    %349 = vector.shape_cast %346 : vector<8x32xf32> to vector<8x1x32xf32>
    tpu.vector_store %arg15[%c0_86, %c6_87, %c0_88], %349 {strides = array<i32>} : memref<8x8x32xf32, #tpu.memory_space<vmem>>, vector<8x1x32xf32>,
    %350 = vector.extract_strided_slice %194 {offsets = [7, 0, 0], sizes = [1, 8, 128], strides = [1, 1, 1]} : vector<8x8x128xf32> to vector<1x8x128xf32>
    %351 = vector.shape_cast %350 : vector<1x8x128xf32> to vector<8x128xf32>
    %cst_89 = arith.constant dense<0.000000e+00> : vector<8x128xf32>
    %352 = tpu.matmul %346, %195, %cst_89 {dimension_numbers = #tpu.dot_dimension_numbers<[1], [0], [0], [1], [0, 0, 1, 1], [], []>} : vector<8x32xf32>, vector<32x128xf32>, vector<8x128xf32> -> vector<8x128xf32>
    %353 = arith.addf %351, %352 : vector<8x128xf32>
    %354 = arith.negf %353 : vector<8x128xf32>
    %355 = math.exp %354 : vector<8x128xf32>
    %cst_90 = arith.constant 1.000000e+00 : f32
    %356 = vector.broadcast %cst_90 : f32 to vector<8x128xf32>
    %357 = arith.addf %356, %355 : vector<8x128xf32>
    %358 = arith.divf %356, %357 : vector<8x128xf32>
    %359 = math.tanh %353 : vector<8x128xf32>
    %360 = vector.extract_strided_slice %358 {offsets = [0, 0], sizes = [8, 32], strides = [1, 1]} : vector<8x128xf32> to vector<8x32xf32>
    %361 = vector.extract_strided_slice %358 {offsets = [0, 32], sizes = [8, 32], strides = [1, 1]} : vector<8x128xf32> to vector<8x32xf32>
    %362 = vector.extract_strided_slice %359 {offsets = [0, 64], sizes = [8, 32], strides = [1, 1]} : vector<8x128xf32> to vector<8x32xf32>
    %363 = vector.extract_strided_slice %358 {offsets = [0, 96], sizes = [8, 32], strides = [1, 1]} : vector<8x128xf32> to vector<8x32xf32>
    %364 = arith.mulf %361, %344 : vector<8x32xf32>
    %365 = arith.mulf %360, %362 : vector<8x32xf32>
    %366 = arith.addf %364, %365 : vector<8x32xf32>
    %367 = math.tanh %366 : vector<8x32xf32>
    %368 = arith.mulf %363, %367 : vector<8x32xf32>
    %c0_91 = arith.constant 0 : index
    %c7_92 = arith.constant 7 : index
    %c0_93 = arith.constant 0 : index
    %369 = vector.load %arg15[%c0_91, %c7_92, %c0_93] : memref<8x8x32xf32, #tpu.memory_space<vmem>>, vector<8x1x32xf32>
    %370 = vector.shape_cast %369 : vector<8x1x32xf32> to vector<8x32xf32>
    %371 = vector.shape_cast %368 : vector<8x32xf32> to vector<8x1x32xf32>
    tpu.vector_store %arg15[%c0_91, %c7_92, %c0_93], %371 {strides = array<i32>} : memref<8x8x32xf32, #tpu.memory_space<vmem>>, vector<8x1x32xf32>,
    %c0_94 = arith.constant 0 : index
    %c0_95 = arith.constant 0 : index
    %c0_96 = arith.constant 0 : index
    %372 = vector.load %arg15[%c0_94, %c0_95, %c0_96] : memref<8x8x32xf32, #tpu.memory_space<vmem>>, vector<8x8x32xf32>
    %373 = vector.shape_cast %372 : vector<8x8x32xf32> to vector<64x32xf32>
    %c0_97 = arith.constant 0 : index
    %c0_98 = arith.constant 0 : index
    %374 = vector.load %arg8[%c0_97, %c0_98] : memref<32x96xf32, #tpu.memory_space<vmem>>, vector<32x96xf32>
    %cst_99 = arith.constant dense<0.000000e+00> : vector<64x96xf32>
    %375 = tpu.matmul %373, %374, %cst_99 {dimension_numbers = #tpu.dot_dimension_numbers<[1], [0], [0], [1], [0, 0, 1, 1], [], []>} : vector<64x32xf32>, vector<32x96xf32>, vector<64x96xf32> -> vector<64x96xf32>
    %c0_100 = arith.constant 0 : index
    %c0_101 = arith.constant 0 : index
    %376 = vector.load %arg9[%c0_100, %c0_101] : memref<1x96xf32, #tpu.memory_space<vmem>>, vector<1x96xf32>
    %377 = vector.broadcast %376 : vector<1x96xf32> to vector<64x96xf32>
    %378 = arith.addf %375, %377 : vector<64x96xf32>
    %379 = vector.shape_cast %378 : vector<64x96xf32> to vector<8x8x96xf32>
    %380 = vector.extract_strided_slice %379 {offsets = [0, 0, 0], sizes = [8, 8, 32], strides = [1, 1, 1]} : vector<8x8x96xf32> to vector<8x8x32xf32>
    %381 = vector.extract_strided_slice %379 {offsets = [0, 0, 32], sizes = [8, 8, 32], strides = [1, 1, 1]} : vector<8x8x96xf32> to vector<8x8x32xf32>
    %382 = vector.extract_strided_slice %379 {offsets = [0, 0, 64], sizes = [8, 8, 32], strides = [1, 1, 1]} : vector<8x8x96xf32> to vector<8x8x32xf32>
    "tpu.trace_start"() <{level = 10 : i32, message = "ntg,nsg->nts"}> : () -> ()
    %cst_102 = arith.constant dense<0.000000e+00> : vector<8x8x8xf32>
    %383 = tpu.matmul %380, %381, %cst_102 {dimension_numbers = #tpu.dot_dimension_numbers<[2], [2], [1], [1], [0, 0, 0, 1, 1, 1], [0], [0]>} : vector<8x8x32xf32>, vector<8x8x32xf32>, vector<8x8x8xf32> -> vector<8x8x8xf32>
    "tpu.trace_stop"() : () -> ()
    %c0_103 = arith.constant 0 : index
    %c0_104 = arith.constant 0 : index
    %384 = vector.load %arg12[%c0_103, %c0_104] : memref<8x8xf32, #tpu.memory_space<vmem>>, vector<8x8xf32>
    %385 = vector.shape_cast %384 : vector<8x8xf32> to vector<1x8x8xf32>
    %386 = vector.broadcast %385 : vector<1x8x8xf32> to vector<8x8x8xf32>
    %387 = arith.addf %383, %386 : vector<8x8x8xf32>
    %cst_105 = arith.constant dense<0xFF800000> : vector<8x8xf32>
    %388 = vector.multi_reduction <maximumf>, %387, %cst_105 [2] : vector<8x8x8xf32> to vector<8x8xf32>
    %389 = vector.shape_cast %388 : vector<8x8xf32> to vector<8x8x1xf32>
    %390 = vector.broadcast %389 : vector<8x8x1xf32> to vector<8x8x8xf32>
    %391 = arith.subf %387, %390 : vector<8x8x8xf32>
    %392 = math.exp %391 : vector<8x8x8xf32>
    %cst_106 = arith.constant dense<0.000000e+00> : vector<8x8xf32>
    %393 = vector.multi_reduction <add>, %392, %cst_106 [2] : vector<8x8x8xf32> to vector<8x8xf32>
    %394 = vector.shape_cast %393 : vector<8x8xf32> to vector<8x8x1xf32>
    %395 = tpu.reciprocal %394 {approx = true} : vector<8x8x1xf32> -> vector<8x8x1xf32>
    %396 = vector.broadcast %395 : vector<8x8x1xf32> to vector<8x8x8xf32>
    %397 = arith.mulf %392, %396 : vector<8x8x8xf32>
    "tpu.trace_start"() <{level = 10 : i32, message = "nts,nsh->nth"}> : () -> ()
    %cst_107 = arith.constant dense<0.000000e+00> : vector<8x8x32xf32>
    %398 = tpu.matmul %397, %382, %cst_107 {dimension_numbers = #tpu.dot_dimension_numbers<[2], [1], [1], [2], [0, 0, 0, 1, 1, 2], [0], [0]>} : vector<8x8x8xf32>, vector<8x8x32xf32>, vector<8x8x32xf32> -> vector<8x8x32xf32>
    "tpu.trace_stop"() : () -> ()
    %399 = vector.shape_cast %398 : vector<8x8x32xf32> to vector<64x32xf32>
    %c0_108 = arith.constant 0 : index
    %c0_109 = arith.constant 0 : index
    %400 = vector.load %arg10[%c0_108, %c0_109] : memref<32x128xf32, #tpu.memory_space<vmem>>, vector<32x128xf32>
    %cst_110 = arith.constant dense<0.000000e+00> : vector<64x128xf32>
    %401 = tpu.matmul %399, %400, %cst_110 {dimension_numbers = #tpu.dot_dimension_numbers<[1], [0], [0], [1], [0, 0, 1, 1], [], []>} : vector<64x32xf32>, vector<32x128xf32>, vector<64x128xf32> -> vector<64x128xf32>
    %c0_111 = arith.constant 0 : index
    %c0_112 = arith.constant 0 : index
    %402 = vector.load %arg11[%c0_111, %c0_112] : memref<1x128xf32, #tpu.memory_space<vmem>>, vector<1x128xf32>
    %403 = vector.broadcast %402 : vector<1x128xf32> to vector<64x128xf32>
    %404 = arith.addf %401, %403 : vector<64x128xf32>
    %405 = vector.shape_cast %404 : vector<64x128xf32> to vector<8x8x128xf32>
    %c0_113 = arith.constant 0 : index
    %c0_114 = arith.constant 0 : index
    %c0_115 = arith.constant 0 : index
    %406 = vector.load %arg13[%c0_113, %c0_114, %c0_115] : memref<8x8x128xf32, #tpu.memory_space<vmem>>, vector<8x8x128xf32>
    tpu.vector_store %arg13[%c0_113, %c0_114, %c0_115], %405 {strides = array<i32>} : memref<8x8x128xf32, #tpu.memory_space<vmem>>, vector<8x8x128xf32>,
    return
  }
}

</mosaic_0001>

<bundles_post_ra>
// kernel: generative_decoder_forward.1
= control target key start
LH: loop header
LB: loop body
LE: loop exit
PB: predicated region body
PF: predicated region fallthrough
CT: control target
= control target key end

     0   :  { %vm64_vm0 = vcmask 261120   ;;  %v5372_v3 = vmov 0.0|0.0   ;;  %vm5373_vm1 = vmmov 0   ;;  %v5374_v4 = vmov 0.0   ;;  %s5378_s26 = smov 96   ;;  %s6328_s2 = inlined_call_operand.vmem [shape: f32[32,128], index: 2, kind: input, shape index: {}]   ;;  %s6329_s0 = inlined_call_operand.vmem [shape: f32[8,8,32], index: 0, kind: input, shape index: {}]   ;;  %s6330_s3 = inlined_call_operand.vmem [shape: f32[32,128], index: 3, kind: input, shape index: {}]   ;;  %s6331_s1 = inlined_call_operand.vmem [shape: f32[8,32], index: 1, kind: input, shape index: {}]   ;;  %s6332_s4 = inlined_call_operand.vmem [shape: f32[1,128], index: 4, kind: input, shape index: {}]   ;;  %s6333_s5 = inlined_call_operand.vmem [shape: f32[32,128], index: 5, kind: input, shape index: {}]   ;;  %s6334_s6 = inlined_call_operand.vmem [shape: f32[32,128], index: 6, kind: input, shape index: {}]   ;;  %s6335_s7 = inlined_call_operand.vmem [shape: f32[1,128], index: 7, kind: input, shape index: {}]   ;;  %s6336_s8 = inlined_call_operand.vmem [shape: f32[32,96], index: 8, kind: input, shape index: {}]   ;;  %s6337_s9 = inlined_call_operand.vmem [shape: f32[1,96], index: 9, kind: input, shape index: {}]   ;;  %s6338_s12 = inlined_call_operand.vmem [shape: f32[8,8], index: 12, kind: input, shape index: {}]   ;;  %s6339_s10 = inlined_call_operand.vmem [shape: f32[32,128], index: 10, kind: input, shape index: {}]   ;;  %s6340_s11 = inlined_call_operand.vmem [shape: f32[1,128], index: 11, kind: input, shape index: {}]   ;;  %s6341_s13 = inlined_call_operand.vmem [shape: f32[8,8,128], index: 13, kind: output, shape index: {}]  }
   0x1   :  { %v53_v0 = vld [vmem:[%s6328_s2] sm:$0xff]  ;;  %v54_v1 = vld [vmem:[%s6328_s2 + $0x8] sm:$0xff]  ;;  %v55_v2 = vld [vmem:[%s6328_s2 + $0x10] sm:$0xff]  ;;  %5091 = vmatprep.subr.bf16.mxu1 %v5372_v3  ;;  %4780 = vmatprep.mubr.msk.f32.mxu1 %vm5373_vm1, %v5374_v4  ;;  %vm1375_vm2 = vcmask 253952   ;;  %vm3640_vm3 = vcmask 64512  }
   0x2   :  { %v5077_v5 = vpack.c.bf16 %v54_v1, %v53_v0  ;;  %v56_v6 = vld [vmem:[%s6328_s2 + $0x18] sm:$0xff]  ;;  %v45_v7 = vld [vmem:[%s6329_s0] sm:$0xff]  ;;  %v195_v10 = vld [vmem:[%s6330_s3 + $0x8] sm:$0xff] }
   0x3   :  { %v5081_v8 = vpack.c.bf16 %v56_v6, %v55_v2  ;;  %4749 = vmatprep.mubr.msk.f32.mxu0 %vm64_vm0, %v45_v7  ;;  %v194_v9 = vld [vmem:[%s6330_s3] sm:$0xff]  ;;  %v196_v12 = vld [vmem:[%s6330_s3 + $0x10] sm:$0xff]  ;;  %v197_v13 = vld [vmem:[%s6330_s3 + $0x18] sm:$0xff] }
   0x4   :  { %5078 = vmatprep.subr.bf16.mxu0 %v5077_v5  ;;  %v5474_v11 = vpack.c.bf16 %v195_v10, %v194_v9  ;;  %v46_v14 = vld [vmem:[%s6329_s0 + $0x8] sm:$0xff]  ;;  %v5487_v15 = vpack.c.bf16 %v197_v13, %v196_v12  ;;  %v47_v16 = vld [vmem:[%s6329_s0 + $0x10] sm:$0xff]  ;;  %v48_v17 = vld [vmem:[%s6329_s0 + $0x18] sm:$0xff] }
   0x5   :  { %5080 = vmatpush3.bf16.msra.mxu0 %v5077_v5  ;;  %v49_v18 = vld [vmem:[%s6329_s0 + $0x20] sm:$0xff]  ;;  %v50_v19 = vld [vmem:[%s6329_s0 + $0x28] sm:$0xff]  ;;  %v51_v20 = vld [vmem:[%s6329_s0 + $0x30] sm:$0xff] }
   0x6   :  { %5082 = vmatprep.subr.bf16.mxu0 %v5081_v8  ;;  %5093 = vmatpush3.bf16.msra.mxu1 %v5474_v11  ;;  %v52_v21 = vld [vmem:[%s6329_s0 + $0x38] sm:$0xff]  ;;  %v5526_v22 = vld [vmem:[%s6331_s1] sm:$0xff]  ;;  %s5375_s1 = smov 64  }
   0x7   :  { %5094 = vmatprep.subr.bf16.mxu1 %v5372_v3  ;;  %v4489_v23 = vld [vmem:[%s6332_s4] ss:$0 sm:$0xff]  ;;  %s5376_s4 = smov 32  }
   0x9   :  { %5084 = vmatpush3.bf16.msra.mxu0 %v5081_v8 }
   0xa   :  { %5085 = vmatprep.subr.bf16.mxu0 %v5372_v3  ;;  %5096 = vmatpush3.bf16.msra.mxu1 %v5487_v15 }
   0xb   :  { %5103 = vmatprep.subr.bf16.mxu1 %v5372_v3 }
   0xc   :  { %4750 = vmatmul.mubr.msk.f32.vlgmr.msra.gmra.mrb[0].mxu0 %vm64_vm0, %v46_v14 }
   0xd   :  { %4752 = vmatprep.mubr.msk.f32.mxu0 %vm64_vm0, %v47_v16  ;;  %5087 = vmatpush3.bf16.msra.mxu0 %v5474_v11 }
   0xe   :  { %5088 = vmatprep.subr.bf16.mxu0 %v5372_v3 }
  0x10   :  { %4753 = vmatmul.mubr.msk.f32.gmra.mrb[2].mxu0 %vm64_vm0, %v48_v17 }
  0x11   :  { %4755 = vmatprep.mubr.msk.f32.mxu0 %vm64_vm0, %v49_v18  ;;  %5090 = vmatpush3.bf16.msra.mxu0 %v5487_v15 }
  0x12   :  { %5097 = vmatprep.subr.bf16.mxu0 %v5372_v3 }
  0x14   :  { %4756 = vmatmul.mubr.msk.f32.gmra.mrb[4].mxu0 %vm64_vm0, %v50_v19 }
  0x15   :  { %4758 = vmatprep.mubr.msk.f32.mxu0 %vm64_vm0, %v51_v20 }
  0x18   :  { %4759 = vmatmul.mubr.msk.f32.gmra.mrb[6].mxu0 %vm64_vm0, %v52_v21 }
  0x19   :  { %4769 = vmatprep.mubr.msk.f32.mxu0 %vm5373_vm1, %v5374_v4 }
  0x1c   :  { %4770 = vmatmul.mubr.msk.f32.vlgmr.msra.gmra.mrb[8].mxu0 %vm64_vm0, %v5526_v22 }
  0x1d   :  { %5099 = vmatpush3.bf16.msra.mxu0 %v5474_v11  ;;  %4791 = vmatprep.mubr.msk.f32.mxu0 %vm5373_vm1, %v5374_v4 }
  0x1e   :  { %5100 = vmatprep.subr.bf16.mxu0 %v5372_v3 }
  0x21   :  { %5102 = vmatpush3.bf16.msra.mxu0 %v5487_v15 }
  0x22   :  { %5109 = vmatprep.subr.bf16.mxu0 %v5372_v3 }
  0xdf   :  { %v4751_v24 = vpop.f32.mrb[0].mxu0 }
  0xe0   :  { %v161_v25 = vadd.f32 %v4751_v24, %v4489_v23  ;;  %v155_v26 = vpop.f32.mrb[1].mxu0 }
  0xe1   :  { %v156_v39 = vadd.f32 %v4489_v23, %v155_v26 }
  0xe3   :  { %v4754_v27 = vpop.f32.mrb[2].mxu0 }
  0xe4   :  { %v5539_v28 = vadd.f32 %v4754_v27, %v4489_v23  ;;  %v165_v29 = vpop.f32.mrb[3].mxu0 }
  0xe5   :  { %v5541_v30 = vadd.f32 %v4489_v23, %v165_v29 }
  0xe7   :  { %v4757_v31 = vpop.f32.mrb[4].mxu0 }
  0xe8   :  { %v5543_v32 = vadd.f32 %v4757_v31, %v4489_v23  ;;  %v175_v33 = vpop.f32.mrb[5].mxu0 }
  0xe9   :  { %v5545_v34 = vadd.f32 %v4489_v23, %v175_v33 }
  0xeb   :  { %v4760_v35 = vpop.f32.mrb[6].mxu0 }
  0xec   :  { %v5547_v36 = vadd.f32 %v4760_v35, %v4489_v23  ;;  %v185_v37 = vpop.f32.mrb[7].mxu0 }
  0xed   :  { %v5549_v38 = vadd.f32 %v4489_v23, %v185_v37 }
  0xef   :  { %v267_v40 = vpop.f32.mrb[8].mxu0 }
  0xf0   :  { %v271_v41 = vadd.f32 %v267_v40, %v156_v39  ;;  %v4771_v42 = vpop.f32.mrb[9].mxu0 }
  0xf2   :  { %5212 = vtanh.f32 %v271_v41  ;;  %v4499_v44 = vmul.f32 -1.442695, %v271_v41 }
  0xf4   :  { %5214 = vpow2.f32 %v4499_v44 }
  0xfc   :  { %v5213_v43 = vpop.eup %5212 }
  0xfd   :  { %281 = vrot.lane.b32.xlu0 %v5213_v43, %s5375_s1 }
  0xfe   :  { %v5215_v45 = vpop.eup %5214 }
  0xff   :  { %v275_v46 = vadd.f32 1.0, %v5215_v45 }
 0x101   :  { %5216 = vrcp.f32 %v275_v46 }
 0x10b   :  { %v5217_v47 = vpop.eup %5216 }
 0x10c   :  { %v279_v50 = vmul.f32 0.0, %v5217_v47 }
 0x16f   :  { %v282_v48 = vpop.permute.xlu0 %281 }
 0x170   :  { %v284_v49 = vmul.f32 %v5217_v47, %v282_v48 }
 0x172   :  { %286 = vrot.lane.b32.xlu0 %v284_v49, %s5376_s4 }
 0x1e4   :  { %v287_v51 = vpop.permute.xlu0 %286 }
 0x1e5   :  { %v289_v52 = vadd.f32 %v287_v51, %v279_v50 }
 0x1e7   :  { %5218 = vtanh.f32 %v289_v52 }
 0x1f1   :  { %v5219_v53 = vpop.eup %5218 }
 0x1f2   :  { %292 = vrot.lane.b32.xlu1 %v5219_v53, %s5375_s1 }
 0x264   :  { %v293_v54 = vpop.permute.xlu1 %292 }
 0x265   :  { %v295_v55 = vmul.f32 %v5217_v47, %v293_v54 }
 0x267   :  { %297 = vrot.lane.b32.xlu1 %v295_v55, %s5376_s4 }
 0x2d9   :  { %v298_v56 = vpop.permute.xlu1 %297 }
 0x2da   :  { %300 = vst.msk [vmem:[#allocation2] sm:$0xff] %vm64_vm0, %v298_v56  ;;  %4781 = vmatmul.mubr.msk.f32.vlgmr.msra.gmra.mrb[0].mxu1 %vm64_vm0, %v298_v56 }
 0x2db   :  { %5105 = vmatpush3.bf16.msra.mxu1 %v5474_v11  ;;  %4802 = vmatprep.mubr.msk.f32.mxu1 %vm5373_vm1, %v5374_v4 }
 0x2dc   :  { %5106 = vmatprep.subr.bf16.mxu1 %v5372_v3 }
 0x2df   :  { %5108 = vmatpush3.bf16.msra.mxu1 %v5487_v15 }
 0x2e0   :  { %5115 = vmatprep.subr.bf16.mxu1 %v5372_v3 }
 0x3ad   :  { %v369_v57 = vpop.f32.mrb[0].mxu1 }
 0x3ae   :  { %v373_v58 = vadd.f32 %v369_v57, %v161_v25  ;;  %v4782_v59 = vpop.f32.mrb[1].mxu1 }
 0x3b0   :  { %5220 = vtanh.f32 %v373_v58  ;;  %v4501_v61 = vmul.f32 -1.442695, %v373_v58 }
 0x3b2   :  { %5222 = vpow2.f32 %v4501_v61 }
 0x3ba   :  { %v5221_v60 = vpop.eup %5220 }
 0x3bb   :  { %383 = vrot.lane.b32.xlu0 %v5221_v60, %s5375_s1 }
 0x3bc   :  { %v5223_v62 = vpop.eup %5222 }
 0x3bd   :  { %v377_v63 = vadd.f32 1.0, %v5223_v62 }
 0x3bf   :  { %5224 = vrcp.f32 %v377_v63 }
 0x3c9   :  { %v5225_v0 = vpop.eup %5224 }
 0x3ca   :  { %v381_v5 = vmul.f32 %v5225_v0, %v289_v52 }
 0x42d   :  { %v384_v1 = vpop.permute.xlu0 %383 }
 0x42e   :  { %v386_v2 = vmul.f32 %v5225_v0, %v384_v1 }
 0x430   :  { %388 = vrot.lane.b32.xlu1 %v386_v2, %s5376_s4 }
 0x4a2   :  { %v389_v6 = vpop.permute.xlu1 %388 }
 0x4a3   :  { %v391_v7 = vadd.f32 %v389_v6, %v381_v5 }
 0x4a5   :  { %5226 = vtanh.f32 %v391_v7 }
 0x4af   :  { %v5227_v8 = vpop.eup %5226 }
 0x4b0   :  { %394 = vrot.lane.b32.xlu0 %v5227_v8, %s5375_s1 }
 0x522   :  { %v395_v9 = vpop.permute.xlu0 %394 }
 0x523   :  { %v397_v10 = vmul.f32 %v5225_v0, %v395_v9 }
 0x525   :  { %399 = vrot.lane.b32.xlu1 %v397_v10, %s5376_s4 }
 0x597   :  { %v400_v12 = vpop.permute.xlu1 %399 }
 0x598   :  { %403 = vst.msk [vmem:[#allocation2 + $0x8] sm:$0xff] %vm64_vm0, %v400_v12  ;;  %4792 = vmatmul.mubr.msk.f32.vlgmr.msra.gmra.mrb[10].mxu0 %vm64_vm0, %v400_v12 }
 0x599   :  { %5111 = vmatpush3.bf16.msra.mxu0 %v5474_v11  ;;  %4813 = vmatprep.mubr.msk.f32.mxu0 %vm5373_vm1, %v5374_v4 }
 0x59a   :  { %5112 = vmatprep.subr.bf16.mxu0 %v5372_v3 }
 0x59d   :  { %5114 = vmatpush3.bf16.msra.mxu0 %v5487_v15 }
 0x59e   :  { %5121 = vmatprep.subr.bf16.mxu0 %v5372_v3 }
 0x66b   :  { %v472_v13 = vpop.f32.mrb[10].mxu0 }
 0x66c   :  { %v476_v14 = vadd.f32 %v472_v13, %v5541_v30  ;;  %v4793_v16 = vpop.f32.mrb[11].mxu0 }
 0x66e   :  { %5228 = vtanh.f32 %v476_v14  ;;  %v4503_v18 = vmul.f32 -1.442695, %v476_v14 }
 0x670   :  { %5230 = vpow2.f32 %v4503_v18 }
 0x678   :  { %v5229_v17 = vpop.eup %5228 }
 0x679   :  { %486 = vrot.lane.b32.xlu0 %v5229_v17, %s5375_s1 }
 0x67a   :  { %v5231_v19 = vpop.eup %5230 }
 0x67b   :  { %v480_v20 = vadd.f32 1.0, %v5231_v19 }
 0x67d   :  { %5232 = vrcp.f32 %v480_v20  ;;  %v1031_v20 = vld [vmem:[%s6333_s5 + $0x8] sm:$0xff] }
 0x687   :  { %v5233_v21 = vpop.eup %5232 }
 0x688   :  { %v484_v25 = vmul.f32 %v5233_v21, %v391_v7 }
 0x6eb   :  { %v487_v23 = vpop.permute.xlu0 %486 }
 0x6ec   :  { %v489_v24 = vmul.f32 %v5233_v21, %v487_v23 }
 0x6ee   :  { %491 = vrot.lane.b32.xlu1 %v489_v24, %s5376_s4 }
 0x760   :  { %v492_v26 = vpop.permute.xlu1 %491 }
 0x761   :  { %v494_v27 = vadd.f32 %v492_v26, %v484_v25  ;;  %v1032_v26 = vld [vmem:[%s6333_s5 + $0x10] sm:$0xff] }
 0x763   :  { %5234 = vtanh.f32 %v494_v27 }
 0x76d   :  { %v5235_v29 = vpop.eup %5234 }
 0x76e   :  { %497 = vrot.lane.b32.xlu0 %v5235_v29, %s5375_s1 }
 0x7e0   :  { %v498_v30 = vpop.permute.xlu0 %497 }
 0x7e1   :  { %v500_v31 = vmul.f32 %v5233_v21, %v498_v30 }
 0x7e3   :  { %502 = vrot.lane.b32.xlu1 %v500_v31, %s5376_s4  ;;  %v1022_v31 = vld [vmem:[#allocation2] sm:$0xff] }
 0x855   :  { %v503_v33 = vpop.permute.xlu1 %502 }
 0x856   :  { %506 = vst.msk [vmem:[#allocation2 + $0x10] sm:$0xff] %vm64_vm0, %v503_v33  ;;  %4803 = vmatmul.mubr.msk.f32.vlgmr.msra.gmra.mrb[2].mxu1 %vm64_vm0, %v503_v33  ;;  %v1023_v33 = vld [vmem:[#allocation2 + $0x8] sm:$0xff] }
 0x857   :  { %5117 = vmatpush3.bf16.msra.mxu1 %v5474_v11  ;;  %4824 = vmatprep.mubr.msk.f32.mxu1 %vm5373_vm1, %v5374_v4 }
 0x858   :  { %5118 = vmatprep.subr.bf16.mxu1 %v5372_v3 }
 0x85b   :  { %5120 = vmatpush3.bf16.msra.mxu1 %v5487_v15 }
 0x85c   :  { %5127 = vmatprep.subr.bf16.mxu1 %v5372_v3 }
 0x929   :  { %v575_v35 = vpop.f32.mrb[2].mxu1 }
 0x92a   :  { %v579_v37 = vadd.f32 %v575_v35, %v5539_v28  ;;  %v4804_v39 = vpop.f32.mrb[3].mxu1  ;;  %v1024_v35 = vld [vmem:[#allocation2 + $0x10] sm:$0xff] }
 0x92c   :  { %5236 = vtanh.f32 %v579_v37  ;;  %v4505_v41 = vmul.f32 -1.442695, %v579_v37 }
 0x92e   :  { %5238 = vpow2.f32 %v4505_v41 }
 0x936   :  { %v5237_v40 = vpop.eup %5236 }
 0x937   :  { %589 = vrot.lane.b32.xlu0 %v5237_v40, %s5375_s1 }
 0x938   :  { %v5239_v42 = vpop.eup %5238 }
 0x939   :  { %v583_v43 = vadd.f32 1.0, %v5239_v42 }
 0x93b   :  { %5240 = vrcp.f32 %v583_v43 }
 0x945   :  { %v5241_v44 = vpop.eup %5240 }
 0x946   :  { %v587_v47 = vmul.f32 %v5241_v44, %v494_v27  ;;  %v1033_v27 = vld [vmem:[%s6333_s5 + $0x18] sm:$0xff] }
 0x947   :  { %v5137_v29 = vpack.c.bf16 %v1033_v27, %v1032_v26 }
 0x9a9   :  { %v590_v45 = vpop.permute.xlu0 %589 }
 0x9aa   :  { %v592_v46 = vmul.f32 %v5241_v44, %v590_v45 }
 0x9ac   :  { %594 = vrot.lane.b32.xlu1 %v592_v46, %s5376_s4 }
 0xa1e   :  { %v595_v48 = vpop.permute.xlu1 %594 }
 0xa1f   :  { %v597_v49 = vadd.f32 %v595_v48, %v587_v47 }
 0xa21   :  { %5242 = vtanh.f32 %v597_v49 }
 0xa2b   :  { %v5243_v28 = vpop.eup %5242 }
 0xa2c   :  { %600 = vrot.lane.b32.xlu0 %v5243_v28, %s5375_s1 }
 0xa9e   :  { %v601_v50 = vpop.permute.xlu0 %600 }
 0xa9f   :  { %v603_v51 = vmul.f32 %v5241_v44, %v601_v50 }
 0xaa1   :  { %605 = vrot.lane.b32.xlu1 %v603_v51, %s5376_s4 }
 0xb13   :  { %v606_v52 = vpop.permute.xlu1 %605 }
 0xb14   :  { %609 = vst.msk [vmem:[#allocation2 + $0x18] sm:$0xff] %vm64_vm0, %v606_v52  ;;  %4814 = vmatmul.mubr.msk.f32.vlgmr.msra.gmra.mrb[12].mxu0 %vm64_vm0, %v606_v52 }
 0xb15   :  { %5123 = vmatpush3.bf16.msra.mxu0 %v5474_v11  ;;  %4835 = vmatprep.mubr.msk.f32.mxu0 %vm5373_vm1, %v5374_v4 }
 0xb16   :  { %5124 = vmatprep.subr.bf16.mxu0 %v5372_v3 }
 0xb19   :  { %5126 = vmatpush3.bf16.msra.mxu0 %v5487_v15 }
 0xb1b   :  { %v1025_v37 = vld [vmem:[#allocation2 + $0x18] sm:$0xff] }
 0xbe7   :  { %v678_v53 = vpop.f32.mrb[12].mxu0 }
 0xbe8   :  { %v682_v54 = vadd.f32 %v678_v53, %v5545_v34  ;;  %v4815_v55 = vpop.f32.mrb[13].mxu0 }
 0xbea   :  { %5244 = vtanh.f32 %v682_v54  ;;  %v4507_v57 = vmul.f32 -1.442695, %v682_v54 }
 0xbec   :  { %5246 = vpow2.f32 %v4507_v57 }
 0xbf4   :  { %v5245_v56 = vpop.eup %5244 }
 0xbf5   :  { %692 = vrot.lane.b32.xlu0 %v5245_v56, %s5375_s1 }
 0xbf6   :  { %v5247_v58 = vpop.eup %5246 }
 0xbf7   :  { %v686_v59 = vadd.f32 1.0, %v5247_v58 }
 0xbf9   :  { %5248 = vrcp.f32 %v686_v59  ;;  %v1170_v59 = vld [vmem:[%s6334_s6] sm:$0xff] }
 0xc03   :  { %v5249_v60 = vpop.eup %5248 }
 0xc04   :  { %v690_v63 = vmul.f32 %v5249_v60, %v597_v49 }
 0xc67   :  { %v693_v61 = vpop.permute.xlu0 %692 }
 0xc68   :  { %v695_v62 = vmul.f32 %v5249_v60, %v693_v61 }
 0xc6a   :  { %697 = vrot.lane.b32.xlu1 %v695_v62, %s5376_s4  ;;  %v1172_v62 = vld [vmem:[%s6334_s6 + $0x10] sm:$0xff] }
 0xcdc   :  { %v698_v0 = vpop.permute.xlu1 %697 }
 0xcdd   :  { %v700_v1 = vadd.f32 %v698_v0, %v690_v63  ;;  %v1173_v63 = vld [vmem:[%s6334_s6 + $0x18] sm:$0xff] }
 0xcde   :  { %v5672_v0 = vpack.c.bf16 %v1173_v63, %v1172_v62 }
 0xcdf   :  { %5250 = vtanh.f32 %v700_v1 }
 0xce9   :  { %v5251_v34 = vpop.eup %5250 }
 0xcea   :  { %703 = vrot.lane.b32.xlu0 %v5251_v34, %s5375_s1 }
 0xd5c   :  { %v704_v2 = vpop.permute.xlu0 %703 }
 0xd5d   :  { %v706_v5 = vmul.f32 %v5249_v60, %v704_v2  ;;  %v1171_v60 = vld [vmem:[%s6334_s6 + $0x8] sm:$0xff] }
 0xd5e   :  { %v5662_v61 = vpack.c.bf16 %v1171_v60, %v1170_v59 }
 0xd5f   :  { %708 = vrot.lane.b32.xlu1 %v706_v5, %s5376_s4 }
 0xdd1   :  { %v709_v6 = vpop.permute.xlu1 %708 }
 0xdd2   :  { %712 = vst.msk [vmem:[#allocation2 + $0x20] sm:$0xff] %vm64_vm0, %v709_v6  ;;  %4825 = vmatmul.mubr.msk.f32.vlgmr.msra.gmra.mrb[4].mxu1 %vm64_vm0, %v709_v6 }
 0xdd3   :  { %5129 = vmatpush3.bf16.msra.mxu1 %v5474_v11  ;;  %4846 = vmatprep.mubr.msk.f32.mxu1 %vm5373_vm1, %v5374_v4 }
 0xdd4   :  { %5130 = vmatprep.subr.bf16.mxu1 %v5372_v3 }
 0xdd7   :  { %5132 = vmatpush3.bf16.msra.mxu1 %v5487_v15 }
 0xdd8   :  { %5141 = vmatprep.subr.bf16.mxu1 %v5372_v3 }
 0xdd9   :  { %v1026_v39 = vld [vmem:[#allocation2 + $0x20] sm:$0xff] }
 0xea5   :  { %v781_v7 = vpop.f32.mrb[4].mxu1 }
 0xea6   :  { %v785_v8 = vadd.f32 %v781_v7, %v5543_v32  ;;  %v4826_v9 = vpop.f32.mrb[5].mxu1  ;;  %v1030_v32 = vld [vmem:[%s6333_s5] sm:$0xff] }
 0xea7   :  { %v5133_v21 = vpack.c.bf16 %v1031_v20, %v1030_v32 }
 0xea8   :  { %5252 = vtanh.f32 %v785_v8  ;;  %v4509_v12 = vmul.f32 -1.442695, %v785_v8 }
 0xea9   :  { %5134 = vmatprep.subr.bf16.mxu0 %v5133_v21 }
 0xeaa   :  { %5254 = vpow2.f32 %v4509_v12 }
 0xeb2   :  { %v5253_v10 = vpop.eup %5252 }
 0xeb3   :  { %795 = vrot.lane.b32.xlu0 %v5253_v10, %s5375_s1 }
 0xeb4   :  { %v5255_v11 = vpop.eup %5254 }
 0xeb5   :  { %v789_v13 = vadd.f32 1.0, %v5255_v11 }
 0xeb7   :  { %5256 = vrcp.f32 %v789_v13 }
 0xec1   :  { %v5257_v14 = vpop.eup %5256 }
 0xec2   :  { %v793_v15 = vmul.f32 %v5257_v14, %v700_v1 }
 0xf25   :  { %v796_v16 = vpop.permute.xlu0 %795 }
 0xf26   :  { %v798_v17 = vmul.f32 %v5257_v14, %v796_v16 }
 0xf28   :  { %800 = vrot.lane.b32.xlu1 %v798_v17, %s5376_s4 }
 0xf9a   :  { %v801_v18 = vpop.permute.xlu1 %800 }
 0xf9b   :  { %v803_v19 = vadd.f32 %v801_v18, %v793_v15 }
 0xf9d   :  { %5258 = vtanh.f32 %v803_v19 }
 0xfa7   :  { %v5259_v23 = vpop.eup %5258 }
 0xfa8   :  { %806 = vrot.lane.b32.xlu0 %v5259_v23, %s5375_s1 }
0x101a   :  { %v807_v24 = vpop.permute.xlu0 %806 }
0x101b   :  { %v809_v25 = vmul.f32 %v5257_v14, %v807_v24 }
0x101d   :  { %811 = vrot.lane.b32.xlu1 %v809_v25, %s5376_s4 }
0x108f   :  { %v812_v30 = vpop.permute.xlu1 %811 }
0x1090   :  { %815 = vst.msk [vmem:[#allocation2 + $0x28] sm:$0xff] %vm64_vm0, %v812_v30  ;;  %4836 = vmatmul.mubr.msk.f32.vlgmr.msra.gmra.mrb[14].mxu0 %vm64_vm0, %v812_v30 }
0x1091   :  { %5136 = vmatpush3.bf16.msra.mxu0 %v5133_v21  ;;  %4857 = vmatprep.mubr.msk.f32.mxu0 %vm64_vm0, %v1022_v31 }
0x1092   :  { %5138 = vmatprep.subr.bf16.mxu0 %v5137_v29 }
0x1095   :  { %5140 = vmatpush3.bf16.msra.mxu0 %v5137_v29 }
0x1096   :  { %5153 = vmatprep.subr.bf16.mxu0 %v5372_v3 }
0x1097   :  { %v1027_v40 = vld [vmem:[#allocation2 + $0x28] sm:$0xff] }
0x1098   :  { %4858 = vmatmul.mubr.msk.f32.vlgmr.msra.gmra.mrb[16].mxu0 %vm64_vm0, %v1023_v33 }
0x1099   :  { %4860 = vmatprep.mubr.msk.f32.mxu0 %vm64_vm0, %v1024_v35  ;;  %5155 = vmatpush3.bf16.msra.mxu0 %v5662_v61 }
0x109a   :  { %5156 = vmatprep.subr.bf16.mxu0 %v5372_v3 }
0x109c   :  { %4861 = vmatmul.mubr.msk.f32.gmra.mrb[18].mxu0 %vm64_vm0, %v1025_v37 }
0x109d   :  { %4863 = vmatprep.mubr.msk.f32.mxu0 %vm64_vm0, %v1026_v39  ;;  %5158 = vmatpush3.bf16.msra.mxu0 %v5672_v0 }
0x109e   :  { %5165 = vmatprep.subr.bf16.mxu0 %v5372_v3 }
0x10a0   :  { %4864 = vmatmul.mubr.msk.f32.gmra.mrb[20].mxu0 %vm64_vm0, %v1027_v40 }
0x1163   :  { %v884_v41 = vpop.f32.mrb[14].mxu0 }
0x1164   :  { %v888_v42 = vadd.f32 %v884_v41, %v5549_v38  ;;  %v4837_v43 = vpop.f32.mrb[15].mxu0 }
0x1166   :  { %5260 = vtanh.f32 %v888_v42  ;;  %v4511_v50 = vmul.f32 -1.442695, %v888_v42 }
0x1168   :  { %5262 = vpow2.f32 %v4511_v50 }
0x116b   :  { %v5640_v44 = vpop.f32.mrb[16].mxu0 }
0x116c   :  { %v1131_v45 = vpop.f32.mrb[17].mxu0 }
0x116f   :  { %v5642_v46 = vpop.f32.mrb[18].mxu0 }
0x1170   :  { %v5261_v47 = vpop.eup %5260  ;;  %v5644_v48 = vpop.f32.mrb[19].mxu0 }
0x1171   :  { %898 = vrot.lane.b32.xlu0 %v5261_v47, %s5375_s1 }
0x1172   :  { %v5263_v51 = vpop.eup %5262 }
0x1173   :  { %v5647_v49 = vpop.f32.mrb[20].mxu0  ;;  %v892_v38 = vadd.f32 1.0, %v5263_v51 }
0x1174   :  { %v5649_v28 = vpop.f32.mrb[21].mxu0 }
0x1175   :  { %5264 = vrcp.f32 %v892_v38 }
0x117f   :  { %v5265_v52 = vpop.eup %5264 }
0x1180   :  { %v896_v55 = vmul.f32 %v5265_v52, %v803_v19 }
0x11e3   :  { %v899_v53 = vpop.permute.xlu0 %898 }
0x11e4   :  { %v901_v54 = vmul.f32 %v5265_v52, %v899_v53 }
0x11e6   :  { %903 = vrot.lane.b32.xlu1 %v901_v54, %s5376_s4 }
0x1258   :  { %v904_v56 = vpop.permute.xlu1 %903 }
0x1259   :  { %v5652_v57 = vadd.f32 %v904_v56, %v896_v55 }
0x125b   :  { %5266 = vtanh.f32 %v5652_v57 }
0x1265   :  { %v5267_v58 = vpop.eup %5266 }
0x1266   :  { %909 = vrot.lane.b32.xlu0 %v5267_v58, %s5375_s1 }
0x12d8   :  { %v910_v1 = vpop.permute.xlu0 %909 }
0x12d9   :  { %v912_v34 = vmul.f32 %v5265_v52, %v910_v1 }
0x12db   :  { %914 = vrot.lane.b32.xlu1 %v912_v34, %s5376_s4 }
0x134d   :  { %v915_v2 = vpop.permute.xlu1 %914 }
0x134e   :  { %918 = vst.msk [vmem:[#allocation2 + $0x30] sm:$0xff] %vm64_vm0, %v915_v2  ;;  %4847 = vmatmul.mubr.msk.f32.vlgmr.msra.gmra.mrb[6].mxu1 %vm64_vm0, %v915_v2 }
0x134f   :  { %5143 = vmatpush3.bf16.msra.mxu1 %v5662_v61  ;;  %4877 = vmatprep.mubr.msk.f32.mxu1 %vm5373_vm1, %v5374_v4 }
0x1350   :  { %5144 = vmatprep.subr.bf16.mxu1 %v5372_v3 }
0x1353   :  { %5146 = vmatpush3.bf16.msra.mxu1 %v5672_v0 }
0x1354   :  { %5147 = vmatprep.subr.bf16.mxu1 %v5372_v3 }
0x1355   :  { %v1028_v5 = vld [vmem:[#allocation2 + $0x30] sm:$0xff] }
0x1356   :  { %4878 = vmatmul.mubr.msk.f32.vlgmr.msra.gmra.mrb[8].mxu1 %vm64_vm0, %v5526_v22  ;;  %4866 = vmatprep.mubr.msk.f32.mxu0 %vm64_vm0, %v1028_v5  ;;  %v5698_v22 = vld [vmem:[%s6335_s7] ss:$0 sm:$0xff] }
0x1357   :  { %5149 = vmatpush3.bf16.msra.mxu1 %v5662_v61  ;;  %4888 = vmatprep.mubr.msk.f32.mxu1 %vm5373_vm1, %v5374_v4  ;;  %v1132_v9 = vadd.f32 %v5698_v22, %v1131_v45  ;;  %v1137_v45 = vadd.f32 %v5640_v44, %v5698_v22 }
0x1358   :  { %5150 = vmatprep.subr.bf16.mxu1 %v5372_v3 }
0x135b   :  { %5152 = vmatpush3.bf16.msra.mxu1 %v5672_v0 }
0x135c   :  { %5159 = vmatprep.subr.bf16.mxu1 %v5372_v3 }
0x1421   :  { %v987_v6 = vpop.f32.mrb[6].mxu1 }
0x1422   :  { %v991_v7 = vadd.f32 %v987_v6, %v5547_v36  ;;  %v4848_v8 = vpop.f32.mrb[7].mxu1 }
0x1424   :  { %v4513_v24 = vmul.f32 -1.442695, %v991_v7 }
0x1429   :  { %v1240_v10 = vpop.f32.mrb[8].mxu1 }
0x142a   :  { %v1244_v12 = vadd.f32 %v1240_v10, %v1132_v9  ;;  %v4879_v11 = vpop.f32.mrb[9].mxu1 }
0x142c   :  { %5268 = vtanh.f32 %v1244_v12  ;;  %v4524_v14 = vmul.f32 -1.442695, %v1244_v12 }
0x142e   :  { %5270 = vpow2.f32 %v4524_v14 }
0x1436   :  { %v5269_v13 = vpop.eup %5268 }
0x1437   :  { %1254 = vrot.lane.b32.xlu0 %v5269_v13, %s5375_s1 }
0x1438   :  { %v5271_v16 = vpop.eup %5270 }
0x1439   :  { %v1248_v17 = vadd.f32 1.0, %v5271_v16 }
0x143b   :  { %5272 = vrcp.f32 %v1248_v17 }
0x1445   :  { %v5273_v36 = vpop.eup %5272 }
0x1446   :  { %v1252_v19 = vmul.f32 0.0, %v5273_v36 }
0x14a9   :  { %v1255_v15 = vpop.permute.xlu0 %1254 }
0x14aa   :  { %v1257_v18 = vmul.f32 %v5273_v36, %v1255_v15 }
0x14ac   :  { %1259 = vrot.lane.b32.xlu1 %v1257_v18, %s5376_s4 }
0x151e   :  { %v1260_v32 = vpop.permute.xlu1 %1259 }
0x151f   :  { %v1262_v20 = vadd.f32 %v1260_v32, %v1252_v19 }
0x1521   :  { %5274 = vtanh.f32 %v1262_v20 }
0x1522   :  { %5276 = vtanh.f32 %v991_v7  ;;  %v1142_v7 = vadd.f32 %v5698_v22, %v5644_v48 }
0x1523   :  { %5278 = vpow2.f32 %v4513_v24 }
0x152b   :  { %v5275_v21 = vpop.eup %5274 }
0x152c   :  { %1265 = vrot.lane.b32.xlu0 %v5275_v21, %s5375_s1  ;;  %v5277_v23 = vpop.eup %5276 }
0x152d   :  { %v5279_v25 = vpop.eup %5278 }
0x152e   :  { %v995_v26 = vadd.f32 1.0, %v5279_v25 }
0x1530   :  { %1001 = vrot.lane.b32.xlu0 %v5277_v23, %s5375_s1  ;;  %5280 = vrcp.f32 %v995_v26  ;;  %v1147_v23 = vadd.f32 %v5642_v46, %v5698_v22 }
0x153a   :  { %v5281_v30 = vpop.eup %5280 }
0x153b   :  { %v999_v37 = vmul.f32 %v5281_v30, %v5652_v57 }
0x159e   :  { %v1266_v27 = vpop.permute.xlu0 %1265 }
0x159f   :  { %v5705_v29 = vmul.f32 %v5273_v36, %v1266_v27 }
0x15a1   :  { %1384 = vrot.lane.b32.xlu1 %v5705_v29, %s5376_s4 }
0x15a2   :  { %v1002_v31 = vpop.permute.xlu0 %1001 }
0x15a3   :  { %v1004_v33 = vmul.f32 %v5281_v30, %v1002_v31 }
0x15a5   :  { %1006 = vrot.lane.b32.xlu0 %v1004_v33, %s5376_s4 }
0x1613   :  { %v1385_v35 = vpop.permute.xlu1 %1384 }
0x1614   :  { %4889 = vmatmul.mubr.msk.f32.vlgmr.msra.gmra.mrb[10].mxu1 %vm64_vm0, %v1385_v35 }
0x1615   :  { %5161 = vmatpush3.bf16.msra.mxu1 %v5662_v61  ;;  %4910 = vmatprep.mubr.msk.f32.mxu1 %vm5373_vm1, %v5374_v4 }
0x1616   :  { %5162 = vmatprep.subr.bf16.mxu1 %v5372_v3 }
0x1617   :  { %v1007_v39 = vpop.permute.xlu0 %1006 }
0x1618   :  { %v1009_v40 = vadd.f32 %v1007_v39, %v999_v37 }
0x1619   :  { %5164 = vmatpush3.bf16.msra.mxu1 %v5672_v0 }
0x161a   :  { %5282 = vtanh.f32 %v1009_v40  ;;  %5171 = vmatprep.subr.bf16.mxu1 %v5372_v3 }
0x1624   :  { %v5283_v41 = vpop.eup %5282 }
0x1625   :  { %1012 = vrot.lane.b32.xlu0 %v5283_v41, %s5375_s1 }
0x1697   :  { %v1013_v42 = vpop.permute.xlu0 %1012 }
0x1698   :  { %v1015_v43 = vmul.f32 %v5281_v30, %v1013_v42 }
0x169a   :  { %1017 = vrot.lane.b32.xlu0 %v1015_v43, %s5376_s4 }
0x16e7   :  { %v1454_v47 = vpop.f32.mrb[10].mxu1 }
0x16e8   :  { %v1458_v50 = vadd.f32 %v1454_v47, %v1137_v45  ;;  %v4890_v51 = vpop.f32.mrb[11].mxu1 }
0x16ea   :  { %5284 = vtanh.f32 %v1458_v50  ;;  %v4526_v54 = vmul.f32 -1.442695, %v1458_v50  ;;  %v1152_v50 = vadd.f32 %v5698_v22, %v5649_v28 }
0x16ec   :  { %5286 = vpow2.f32 %v4526_v54 }
0x16f4   :  { %v5285_v38 = vpop.eup %5284 }
0x16f5   :  { %1468 = vrot.lane.b32.xlu1 %v5285_v38, %s5375_s1 }
0x16f6   :  { %v5287_v55 = vpop.eup %5286 }
0x16f7   :  { %v1462_v44 = vadd.f32 1.0, %v5287_v55 }
0x16f9   :  { %5288 = vrcp.f32 %v1462_v44 }
0x1703   :  { %v5289_v56 = vpop.eup %5288 }
0x1704   :  { %v1466_v59 = vmul.f32 %v5289_v56, %v1262_v20 }
0x170c   :  { %v1018_v52 = vpop.permute.xlu0 %1017 }
0x170d   :  { %1021 = vst.msk [vmem:[#allocation2 + $0x38] sm:$0xff] %vm64_vm0, %v1018_v52 }
0x1714   :  { %v1029_v53 = vld [vmem:[#allocation2 + $0x38] sm:$0xff] }
0x1715   :  { %4867 = vmatmul.mubr.msk.f32.gmra.mrb[22].mxu0 %vm64_vm0, %v1029_v53 }
0x1716   :  { %4899 = vmatprep.mubr.msk.f32.mxu0 %vm5373_vm1, %v5374_v4 }
0x1767   :  { %v1469_v57 = vpop.permute.xlu1 %1468 }
0x1768   :  { %v1471_v58 = vmul.f32 %v5289_v56, %v1469_v57 }
0x176a   :  { %1473 = vrot.lane.b32.xlu1 %v1471_v58, %s5376_s4 }
0x17dc   :  { %v1474_v60 = vpop.permute.xlu1 %1473 }
0x17dd   :  { %v1476_v62 = vadd.f32 %v1474_v60, %v1466_v59 }
0x17df   :  { %5290 = vtanh.f32 %v1476_v62 }
0x17e8   :  { %v5728_v63 = vpop.f32.mrb[22].mxu0 }
0x17e9   :  { %v5291_v1 = vpop.eup %5290  ;;  %v5730_v34 = vpop.f32.mrb[23].mxu0 }
0x17ea   :  { %1479 = vrot.lane.b32.xlu1 %v5291_v1, %s5375_s1 }
0x185c   :  { %v1480_v2 = vpop.permute.xlu1 %1479 }
0x185d   :  { %v5733_v5 = vmul.f32 %v5289_v56, %v1480_v2 }
0x185f   :  { %1597 = vrot.lane.b32.xlu1 %v5733_v5, %s5376_s4 }
0x18d1   :  { %v1598_v6 = vpop.permute.xlu1 %1597 }
0x18d2   :  { %4900 = vmatmul.mubr.msk.f32.vlgmr.msra.gmra.mrb[24].mxu0 %vm64_vm0, %v1598_v6 }
0x18d3   :  { %5167 = vmatpush3.bf16.msra.mxu0 %v5662_v61  ;;  %4921 = vmatprep.mubr.msk.f32.mxu0 %vm5373_vm1, %v5374_v4 }
0x18d4   :  { %5168 = vmatprep.subr.bf16.mxu0 %v5372_v3 }
0x18d7   :  { %5170 = vmatpush3.bf16.msra.mxu0 %v5672_v0 }
0x18d8   :  { %5177 = vmatprep.subr.bf16.mxu0 %v5372_v3 }
0x19a5   :  { %v1667_v8 = vpop.f32.mrb[24].mxu0 }
0x19a6   :  { %v1671_v9 = vadd.f32 %v1667_v8, %v1142_v7  ;;  %v4901_v10 = vpop.f32.mrb[25].mxu0  ;;  %v1157_v7 = vadd.f32 %v5647_v49, %v5698_v22 }
0x19a8   :  { %5292 = vtanh.f32 %v1671_v9  ;;  %v4528_v11 = vmul.f32 -1.442695, %v1671_v9 }
0x19aa   :  { %5294 = vpow2.f32 %v4528_v11 }
0x19b2   :  { %v5293_v12 = vpop.eup %5292 }
0x19b3   :  { %1681 = vrot.lane.b32.xlu0 %v5293_v12, %s5375_s1 }
0x19b4   :  { %v5295_v13 = vpop.eup %5294 }
0x19b5   :  { %v1675_v14 = vadd.f32 1.0, %v5295_v13 }
0x19b7   :  { %5296 = vrcp.f32 %v1675_v14 }
0x19c1   :  { %v5297_v16 = vpop.eup %5296 }
0x19c2   :  { %v1679_v15 = vmul.f32 %v5297_v16, %v1476_v62 }
0x1a25   :  { %v1682_v17 = vpop.permute.xlu0 %1681 }
0x1a26   :  { %v1684_v36 = vmul.f32 %v5297_v16, %v1682_v17 }
0x1a28   :  { %1686 = vrot.lane.b32.xlu1 %v1684_v36, %s5376_s4 }
0x1a9a   :  { %v1687_v18 = vpop.permute.xlu1 %1686 }
0x1a9b   :  { %v1689_v48 = vadd.f32 %v1687_v18, %v1679_v15 }
0x1a9d   :  { %5298 = vtanh.f32 %v1689_v48 }
0x1aa7   :  { %v5299_v19 = vpop.eup %5298 }
0x1aa8   :  { %1692 = vrot.lane.b32.xlu0 %v5299_v19, %s5375_s1  ;;  %v1162_v19 = vadd.f32 %v5698_v22, %v5730_v34 }
0x1b1a   :  { %v1693_v32 = vpop.permute.xlu0 %1692 }
0x1b1b   :  { %v5749_v20 = vmul.f32 %v5297_v16, %v1693_v32 }
0x1b1d   :  { %1810 = vrot.lane.b32.xlu1 %v5749_v20, %s5376_s4 }
0x1b8f   :  { %v1811_v21 = vpop.permute.xlu1 %1810 }
0x1b90   :  { %4911 = vmatmul.mubr.msk.f32.vlgmr.msra.gmra.mrb[12].mxu1 %vm64_vm0, %v1811_v21 }
0x1b91   :  { %5173 = vmatpush3.bf16.msra.mxu1 %v5662_v61  ;;  %4932 = vmatprep.mubr.msk.f32.mxu1 %vm5373_vm1, %v5374_v4 }
0x1b92   :  { %5174 = vmatprep.subr.bf16.mxu1 %v5372_v3 }
0x1b95   :  { %5176 = vmatpush3.bf16.msra.mxu1 %v5672_v0 }
0x1b96   :  { %5183 = vmatprep.subr.bf16.mxu1 %v5372_v3 }
0x1c63   :  { %v1880_v24 = vpop.f32.mrb[12].mxu1 }
0x1c64   :  { %v1884_v25 = vadd.f32 %v1880_v24, %v1147_v23  ;;  %v4912_v26 = vpop.f32.mrb[13].mxu1 }
0x1c66   :  { %5300 = vtanh.f32 %v1884_v25  ;;  %v4530_v30 = vmul.f32 -1.442695, %v1884_v25 }
0x1c68   :  { %5302 = vpow2.f32 %v4530_v30 }
0x1c70   :  { %v5301_v27 = vpop.eup %5300 }
0x1c71   :  { %1894 = vrot.lane.b32.xlu0 %v5301_v27, %s5375_s1 }
0x1c72   :  { %v5303_v31 = vpop.eup %5302 }
0x1c73   :  { %v1888_v33 = vadd.f32 1.0, %v5303_v31 }
0x1c75   :  { %5304 = vrcp.f32 %v1888_v33 }
0x1c7f   :  { %v5305_v35 = vpop.eup %5304 }
0x1c80   :  { %v1892_v40 = vmul.f32 %v5305_v35, %v1689_v48 }
0x1ce3   :  { %v1895_v37 = vpop.permute.xlu0 %1894 }
0x1ce4   :  { %v1897_v39 = vmul.f32 %v5305_v35, %v1895_v37 }
0x1ce6   :  { %1899 = vrot.lane.b32.xlu1 %v1897_v39, %s5376_s4 }
0x1d58   :  { %v1900_v41 = vpop.permute.xlu1 %1899 }
0x1d59   :  { %v1902_v46 = vadd.f32 %v1900_v41, %v1892_v40 }
0x1d5b   :  { %5306 = vtanh.f32 %v1902_v46 }
0x1d65   :  { %v5307_v42 = vpop.eup %5306 }
0x1d66   :  { %1905 = vrot.lane.b32.xlu0 %v5307_v42, %s5375_s1  ;;  %v5377_v42 = vmov 1966171168  }
0x1dd8   :  { %v1906_v43 = vpop.permute.xlu0 %1905 }
0x1dd9   :  { %v5765_v45 = vmul.f32 %v5305_v35, %v1906_v43  ;;  %v1272_v43 = vunpack.c.l.s4 %v5377_v42 }
0x1ddb   :  { %2023 = vrot.lane.b32.xlu1 %v5765_v45, %s5376_s4 }
0x1e4d   :  { %v2024_v47 = vpop.permute.xlu1 %2023 }
0x1e4e   :  { %4922 = vmatmul.mubr.msk.f32.vlgmr.msra.gmra.mrb[26].mxu0 %vm64_vm0, %v2024_v47  ;;  %v1274_v47 = vlaneseq }
0x1e4f   :  { %5179 = vmatpush3.bf16.msra.mxu0 %v5662_v61  ;;  %4943 = vmatprep.mubr.msk.f32.mxu0 %vm5373_vm1, %v5374_v4 }
0x1e50   :  { %5180 = vmatprep.subr.bf16.mxu0 %v5372_v3 }
0x1e53   :  { %5182 = vmatpush3.bf16.msra.mxu0 %v5672_v0 }
0x1f21   :  { %v2093_v51 = vpop.f32.mrb[26].mxu0 }
0x1f22   :  { %v2097_v38 = vadd.f32 %v2093_v51, %v1152_v50  ;;  %v4923_v52 = vpop.f32.mrb[27].mxu0  ;;  %v1167_v50 = vadd.f32 %v5728_v63, %v5698_v22 }
0x1f24   :  { %5308 = vtanh.f32 %v2097_v38  ;;  %v4532_v54 = vmul.f32 -1.442695, %v2097_v38 }
0x1f26   :  { %5310 = vpow2.f32 %v4532_v54  ;;  %v1275_v54 = vshrl.u32 %v1274_v47, 7 }
0x1f28   :  { %v5826_v22 = vsub.s32 0, %v1275_v54 }
0x1f2e   :  { %v5309_v53 = vpop.eup %5308 }
0x1f2f   :  { %2107 = vrot.lane.b32.xlu0 %v5309_v53, %s5375_s1  ;;  %v1273_v53 = vunpack.c.0.s8 %v1272_v43 }
0x1f30   :  { %v5311_v55 = vpop.eup %5310 }
0x1f31   :  { %v2101_v44 = vadd.f32 1.0, %v5311_v55  ;;  %v5818_v55 = vsub.s32 %v1273_v53, %v1275_v54 }
0x1f33   :  { %5312 = vrcp.f32 %v2101_v44  ;;  %v1491_v44 = vrot.slane %v5733_v5, %v5818_v55 }
0x1f3d   :  { %v5313_v56 = vpop.eup %5312 }
0x1f3e   :  { %v2105_v59 = vmul.f32 %v5313_v56, %v1902_v46 }
0x1fa1   :  { %v2108_v57 = vpop.permute.xlu0 %2107 }
0x1fa2   :  { %v2110_v58 = vmul.f32 %v5313_v56, %v2108_v57  ;;  %v1507_v57 = vrot.slane %v1491_v44, %v5818_v55 }
0x1fa4   :  { %2112 = vrot.lane.b32.xlu1 %v2110_v58, %s5376_s4 }
0x2016   :  { %v2113_v60 = vpop.permute.xlu1 %2112 }
0x2017   :  { %v2115_v28 = vadd.f32 %v2113_v60, %v2105_v59  ;;  %v1536_v59 = vrot.slane %v1507_v57, %v5826_v22 }
0x2019   :  { %5314 = vtanh.f32 %v2115_v28 }
0x2023   :  { %v5315_v62 = vpop.eup %5314 }
0x2024   :  { %2118 = vrot.lane.b32.xlu0 %v5315_v62, %s5375_s1 }
0x2096   :  { %v2119_v1 = vpop.permute.xlu0 %2118 }
0x2097   :  { %v5780_v2 = vmul.f32 %v5313_v56, %v2119_v1  ;;  %v1917_v56 = vrot.slane %v5765_v45, %v5818_v55  ;;  %v1499_v1 = vcombine.high %v1491_v44, %v1491_v44 }
0x2099   :  { %2236 = vrot.lane.b32.xlu1 %v5780_v2, %s5376_s4  ;;  %v1933_v60 = vrot.slane %v1917_v56, %v5818_v55 }
0x210b   :  { %v2237_v6 = vpop.permute.xlu1 %2236 }
0x210c   :  { %4933 = vmatmul.mubr.msk.f32.vlgmr.msra.gmra.mrb[14].mxu1 %vm64_vm0, %v2237_v6 }
0x210d   :  { %5185 = vmatpush3.bf16.msra.mxu1 %v5662_v61  ;;  %4954 = vmatprep.mubr.msk.f32.mxu1 %vm5373_vm1, %v5374_v4 }
0x210e   :  { %5186 = vmatprep.subr.bf16.mxu1 %v5372_v3 }
0x2111   :  { %5188 = vmatpush3.bf16.msra.mxu1 %v5672_v0 }
0x2112   :  { %4977 = vmatprep.subr.mxu1 %v5374_v4 }
0x21df   :  { %v2306_v8 = vpop.f32.mrb[14].mxu1 }
0x21e0   :  { %v2310_v9 = vadd.f32 %v2306_v8, %v1157_v7  ;;  %v4934_v10 = vpop.f32.mrb[15].mxu1  ;;  %v1521_v7 = vrot.slane %v1499_v1, %v5818_v55  ;;  %v1925_v8 = vcombine.high %v1917_v56, %v1917_v56 }
0x21e2   :  { %5316 = vtanh.f32 %v2310_v9  ;;  %v4534_v61 = vmul.f32 -1.442695, %v2310_v9  ;;  %v1540_v9 = vrot.slane %v1521_v7, %v5826_v22  ;;  %v5841_v10 = vrot.slane %v1925_v8, %v5818_v55 }
0x21e4   :  { %5318 = vpow2.f32 %v4534_v61  ;;  %v1966_v61 = vrot.slane %v5841_v10, %v5826_v22 }
0x21ec   :  { %v5317_v12 = vpop.eup %5316 }
0x21ed   :  { %2320 = vrot.lane.b32.xlu0 %v5317_v12, %s5375_s1 }
0x21ee   :  { %v5319_v11 = vpop.eup %5318 }
0x21ef   :  { %v2314_v13 = vadd.f32 1.0, %v5319_v11 }
0x21f1   :  { %5320 = vrcp.f32 %v2314_v13 }
0x21fb   :  { %v5321_v3 = vpop.eup %5320 }
0x21fc   :  { %v2318_v16 = vmul.f32 %v5321_v3, %v2115_v28  ;;  %v1962_v28 = vrot.slane %v1933_v60, %v5826_v22 }
0x225f   :  { %v2321_v14 = vpop.permute.xlu0 %2320 }
0x2260   :  { %v2323_v0 = vmul.f32 %v5321_v3, %v2321_v14 }
0x2262   :  { %2325 = vrot.lane.b32.xlu1 %v2323_v0, %s5376_s4  ;;  %v1955_v0 = vcombine.high %v1933_v60, %v1933_v60 }
0x22d4   :  { %v2326_v17 = vpop.permute.xlu1 %2325 }
0x22d5   :  { %v2328_v49 = vadd.f32 %v2326_v17, %v2318_v16  ;;  %v1970_v16 = vrot.slane %v1955_v0, %v5826_v22 }
0x22d7   :  { %5322 = vtanh.f32 %v2328_v49 }
0x22e1   :  { %v5323_v36 = vpop.eup %5322 }
0x22e2   :  { %2331 = vrot.lane.b32.xlu0 %v5323_v36, %s5375_s1  ;;  %v1531_v36 = vcombine.high %v1521_v7, %v1521_v7 }
0x2354   :  { %v2332_v15 = vpop.permute.xlu0 %2331 }
0x2355   :  { %v5796_v18 = vmul.f32 %v5321_v3, %v2332_v15  ;;  %v1529_v3 = vcombine.high %v1507_v57, %v1507_v57  ;;  %v1548_v15 = vrot.slane %v1531_v36, %v5826_v22 }
0x2357   :  { %2449 = vrot.lane.b32.xlu1 %v5796_v18, %s5376_s4  ;;  %v2343_v63 = vrot.slane %v5796_v18, %v5818_v55  ;;  %v1544_v14 = vrot.slane %v1529_v3, %v5826_v22 }
0x2359   :  { %v2359_v62 = vrot.slane %v2343_v63, %v5818_v55  ;;  %v2351_v12 = vcombine.high %v2343_v63, %v2343_v63 }
0x235b   :  { %v2388_v6 = vrot.slane %v2359_v62, %v5826_v22  ;;  %v5847_v11 = vrot.slane %v2351_v12, %v5818_v55  ;;  %v2381_v17 = vcombine.high %v2359_v62, %v2359_v62 }
0x235d   :  { %v2392_v13 = vrot.slane %v5847_v11, %v5826_v22 }
0x23c9   :  { %v2450_v48 = vpop.permute.xlu1 %2449 }
0x23ca   :  { %4944 = vmatmul.mubr.msk.f32.vlgmr.msra.gmra.mrb[28].mxu0 %vm64_vm0, %v2450_v48 }
0x249d   :  { %v2519_v32 = vpop.f32.mrb[28].mxu0 }
0x249e   :  { %v2523_v21 = vadd.f32 %v2519_v32, %v1162_v19  ;;  %v4945_v23 = vpop.f32.mrb[29].mxu0 }
0x24a0   :  { %5324 = vtanh.f32 %v2523_v21  ;;  %v4536_v25 = vmul.f32 -1.442695, %v2523_v21  ;;  %v1277_v21 = vrot.slane %v5705_v29, %v5818_v55 }
0x24a2   :  { %5326 = vpow2.f32 %v4536_v25  ;;  %v1704_v25 = vrot.slane %v5749_v20, %v5818_v55 }
0x24a4   :  { %v1712_v53 = vcombine.high %v1704_v25, %v1704_v25 }
0x24a6   :  { %v1734_v56 = vrot.slane %v1712_v53, %v5818_v55 }
0x24a8   :  { %v1753_v63 = vrot.slane %v1734_v56, %v5826_v22 }
0x24aa   :  { %v5325_v24 = vpop.eup %5324 }
0x24ab   :  { %2533 = vrot.lane.b32.xlu0 %v5325_v24, %s5375_s1 }
0x24ac   :  { %v5327_v26 = vpop.eup %5326 }
0x24ad   :  { %v2527_v27 = vadd.f32 1.0, %v5327_v26 }
0x24af   :  { %5328 = vrcp.f32 %v2527_v27  ;;  %v1293_v27 = vrot.slane %v1277_v21, %v5818_v55 }
0x24b1   :  { %v1315_v8 = vcombine.high %v1293_v27, %v1293_v27 }
0x24b3   :  { %v1330_v12 = vrot.slane %v1315_v8, %v5826_v22 }
0x24b9   :  { %v5329_v30 = vpop.eup %5328 }
0x24ba   :  { %v2531_v35 = vmul.f32 %v5329_v30, %v2328_v49  ;;  %v2396_v49 = vrot.slane %v2381_v17, %v5826_v22 }
0x251d   :  { %v2534_v31 = vpop.permute.xlu0 %2533 }
0x251e   :  { %v2536_v33 = vmul.f32 %v5329_v30, %v2534_v31  ;;  %v2130_v31 = vrot.slane %v5780_v2, %v5818_v55 }
0x2520   :  { %2538 = vrot.lane.b32.xlu1 %v2536_v33, %s5376_s4  ;;  %v1322_v33 = vrot.slane %v1293_v27, %v5826_v22  ;;  %v2138_v57 = vcombine.high %v2130_v31, %v2130_v31  ;;  %v2123_v27 = vcombine.high %v5780_v2, %v5780_v2 }
0x2592   :  { %v2539_v37 = vpop.permute.xlu1 %2538 }
0x2593   :  { %v5805_v34 = vadd.f32 %v2539_v37, %v2531_v35  ;;  %v1720_v35 = vrot.slane %v1704_v25, %v5818_v55 }
0x2595   :  { %5330 = vtanh.f32 %v5805_v34 }
0x259f   :  { %v5331_v39 = vpop.eup %5330 }
0x25a0   :  { %2544 = vrot.lane.b32.xlu0 %v5331_v39, %s5375_s1 }
0x2612   :  { %v2545_v40 = vpop.permute.xlu0 %2544 }
0x2613   :  { %v5809_v41 = vmul.f32 %v5329_v30, %v2545_v40  ;;  %v1749_v40 = vrot.slane %v1720_v35, %v5826_v22 }
0x2615   :  { %2662 = vrot.lane.b32.xlu1 %v5809_v41, %s5376_s4  ;;  %v2556_v39 = vrot.slane %v5809_v41, %v5818_v55 }
0x2617   :  { %v2572_v47 = vrot.slane %v2556_v39, %v5818_v55  ;;  %v2564_v60 = vcombine.high %v2556_v39, %v2556_v39 }
0x2619   :  { %v2586_v1 = vrot.slane %v2564_v60, %v5818_v55 }
0x261b   :  { %v2605_v7 = vrot.slane %v2586_v1, %v5826_v22  ;;  %v2596_v25 = vcombine.high %v2586_v1, %v2586_v1 }
0x2687   :  { %v2663_v46 = vpop.permute.xlu1 %2662 }
0x2688   :  { %4955 = vmatmul.mubr.msk.f32.vlgmr.msra.gmra.mrb[16].mxu1 %vm64_vm0, %v2663_v46  ;;  %v2146_v46 = vrot.slane %v2130_v31, %v5818_v55 }
0x2689   :  { %4979 = vmatprep.mubr.msk.f32.mxu1 %vm5373_vm1, %v5374_v4 }
0x268a   :  { %v2175_v43 = vrot.slane %v2146_v46, %v5826_v22 }
0x275b   :  { %v2732_v51 = vpop.f32.mrb[16].mxu1 }
0x275c   :  { %v2736_v38 = vadd.f32 %v2732_v51, %v1167_v50  ;;  %v4956_v52 = vpop.f32.mrb[17].mxu1  ;;  %v1285_v50 = vcombine.high %v1277_v21, %v1277_v21  ;;  %v1697_v21 = vcombine.high %v5749_v20, %v5749_v20  ;;  %v2137_v20 = vrot.slane %v2123_v27, %v5818_v55 }
0x275e   :  { %5332 = vtanh.f32 %v2736_v38  ;;  %v4538_v48 = vmul.f32 -1.442695, %v2736_v38  ;;  %v2601_v38 = vrot.slane %v2572_v47, %v5826_v22  ;;  %v1307_v52 = vrot.slane %v1285_v50, %v5818_v55 }
0x275f   :  { %v1711_v31 = vrot.slane %v1697_v21, %v5818_v55  ;;  %v1910_v21 = vcombine.high %v5765_v45, %v5765_v45 }
0x2760   :  { %5334 = vpow2.f32 %v4538_v48  ;;  %v1326_v44 = vrot.slane %v1307_v52, %v5826_v22  ;;  %v1270_v48 = vcombine.high %v5705_v29, %v5705_v29  ;;  %v2613_v29 = vrot.slane %v2596_v25, %v5826_v22 }
0x2768   :  { %v5333_v58 = vpop.eup %5332 }
0x2769   :  { %2746 = vrot.lane.b32.xlu0 %v5333_v58, %s5375_s1 }
0x276a   :  { %v5335_v19 = vpop.eup %5334 }
0x276b   :  { %v2740_v32 = vadd.f32 1.0, %v5335_v19 }
0x276d   :  { %1565 = vrot.lane.b32.xlu0 %v1536_v59, %s5376_s4  ;;  %5336 = vrcp.f32 %v2740_v32  ;;  %v2160_v59 = vrot.slane %v2138_v57, %v5818_v55 }
0x276f   :  { %v2179_v62 = vrot.slane %v2160_v59, %v5826_v22  ;;  %v2170_v32 = vcombine.high %v2160_v59, %v2160_v59 }
0x2771   :  { %1991 = vrot.lane.b32.xlu0 %v1962_v28, %s5376_s4 }
0x2775   :  { %2417 = vrot.lane.b32.xlu0 %v2388_v6, %s5376_s4 }
0x2777   :  { %v5863_v23 = vpop.eup %5336 }
0x2779   :  { %1567 = vrot.lane.b32.xlu0 %v1540_v9, %s5376_s4 }
0x277d   :  { %1993 = vrot.lane.b32.xlu0 %v1966_v61, %s5376_s4  ;;  %v1742_v61 = vcombine.high %v1720_v35, %v1720_v35 }
0x277f   :  { %v1757_v3 = vrot.slane %v1742_v61, %v5826_v22 }
0x2781   :  { %2419 = vrot.lane.b32.xlu0 %v2392_v13, %s5376_s4 }
0x2785   :  { %1569 = vrot.lane.b32.xlu0 %v1544_v14, %s5376_s4  ;;  %v2168_v14 = vcombine.high %v2146_v46, %v2146_v46 }
0x2787   :  { %v2183_v0 = vrot.slane %v2168_v14, %v5826_v22 }
0x2789   :  { %1995 = vrot.lane.b32.xlu0 %v1970_v16, %s5376_s4  ;;  %v2594_v16 = vcombine.high %v2572_v47, %v2572_v47 }
0x278b   :  { %v2609_v17 = vrot.slane %v2594_v16, %v5826_v22 }
0x278d   :  { %2421 = vrot.lane.b32.xlu0 %v2396_v49, %s5376_s4  ;;  %v1317_v49 = vcombine.high %v1307_v52, %v1307_v52 }
0x278f   :  { %v1334_v36 = vrot.slane %v1317_v49, %v5826_v22 }
0x2791   :  { %1571 = vrot.lane.b32.xlu0 %v1548_v15, %s5376_s4  ;;  %v1744_v15 = vcombine.high %v1734_v56, %v1734_v56 }
0x2793   :  { %v1761_v19 = vrot.slane %v1744_v15, %v5826_v22 }
0x27db   :  { %v2747_v24 = vpop.permute.xlu0 %2746 }
0x27dc   :  { %v2749_v26 = vmul.f32 %v5863_v23, %v2747_v24  ;;  %v2187_v24 = vrot.slane %v2170_v32, %v5826_v22 }
0x27de   :  { %2751 = vrot.lane.b32.xlu1 %v2749_v26, %s5376_s4  ;;  %v1284_v26 = vrot.slane %v1270_v48, %v5818_v55 }
0x27df   :  { %v1566_v30 = vpop.permute.xlu0 %1565 }
0x27e0   :  { %1589 = vst.msk [vmem:[#allocation3 + $0x1] sm:$0x1] %vm1375_vm2, %v1566_v30  ;;  %v1300_v30 = vrot.slane %v1284_v26, %v5818_v55  ;;  %v1286_v46 = vcombine.high %v1284_v26, %v1284_v26 }
0x27e2   :  { %1351 = vrot.lane.b32.xlu1 %v1322_v33, %s5376_s4  ;;  %v2549_v33 = vcombine.high %v5809_v41, %v5809_v41  ;;  %v1338_v35 = vrot.slane %v1300_v30, %v5826_v22  ;;  %v1713_v41 = vcombine.high %v1711_v31, %v1711_v31  ;;  %v1314_v50 = vrot.slane %v1286_v46, %v5818_v55 }
0x27e3   :  { %v1992_v37 = vpop.permute.xlu0 %1991 }
0x27e4   :  { %2015 = vst.msk [vmem:[#allocation3 + $0x3] sm:$0x1] %vm1375_vm2, %v1992_v37  ;;  %v1727_v37 = vrot.slane %v1711_v31, %v5818_v55  ;;  %v2563_v2 = vrot.slane %v2549_v33, %v5818_v55  ;;  %v1741_v52 = vrot.slane %v1713_v41, %v5818_v55  ;;  %v1318_v8 = vcombine.high %v1314_v50, %v1314_v50 }
0x27e6   :  { %1778 = vrot.lane.b32.xlu1 %v1749_v40, %s5376_s4  ;;  %v1765_v39 = vrot.slane %v1727_v37, %v5826_v22  ;;  %v2153_v40 = vrot.slane %v2137_v20, %v5818_v55  ;;  %v2565_v53 = vcombine.high %v2563_v2, %v2563_v2  ;;  %v1743_v59 = vcombine.high %v1727_v37, %v1727_v37 }
0x27e7   :  { %v2418_v42 = vpop.permute.xlu0 %2417  ;;  %v1350_v61 = vrot.slane %v1318_v8, %v5826_v22 }
0x27e8   :  { %2441 = vst.msk [vmem:[#allocation3 + $0x5] sm:$0x1] %vm1375_vm2, %v2418_v42  ;;  %v2191_v42 = vrot.slane %v2153_v40, %v5826_v22  ;;  %v2593_v57 = vrot.slane %v2565_v53, %v5818_v55 }
0x27ea   :  { %2204 = vrot.lane.b32.xlu1 %v2175_v43, %s5376_s4  ;;  %v2579_v43 = vrot.slane %v2563_v2, %v5818_v55 }
0x27eb   :  { %v1568_v51 = vpop.permute.xlu0 %1567 }
0x27ec   :  { %1590 = vst.msk [vmem:[#allocation3 + $0x9] sm:$0x1] %vm1375_vm2, %v1568_v51  ;;  %v2617_v47 = vrot.slane %v2579_v43, %v5826_v22  ;;  %v2139_v51 = vcombine.high %v2137_v20, %v2137_v20 }
0x27ee   :  { %2630 = vrot.lane.b32.xlu1 %v2601_v38, %s5376_s4  ;;  %v1342_v38 = vrot.slane %v1314_v50, %v5826_v22 }
0x27ef   :  { %v1994_v54 = vpop.permute.xlu0 %1993 }
0x27f0   :  { %2016 = vst.msk [vmem:[#allocation3 + $0xb] sm:$0x1] %vm1375_vm2, %v1994_v54  ;;  %v1769_v54 = vrot.slane %v1741_v52, %v5826_v22 }
0x27f2   :  { %1353 = vrot.lane.b32.xlu1 %v1326_v44, %s5376_s4  ;;  %v2167_v44 = vrot.slane %v2139_v51, %v5818_v55 }
0x27f3   :  { %v2420_v58 = vpop.permute.xlu0 %2419 }
0x27f4   :  { %2442 = vst.msk [vmem:[#allocation3 + $0xd] sm:$0x1] %vm1375_vm2, %v2420_v58  ;;  %v2195_v56 = vrot.slane %v2167_v44, %v5826_v22  ;;  %v1316_v58 = vcombine.high %v1300_v30, %v1300_v30  ;;  %v2171_v16 = vcombine.high %v2167_v44, %v2167_v44  ;;  %v1924_v30 = vrot.slane %v1910_v21, %v5818_v55 }
0x27f6   :  { %1780 = vrot.lane.b32.xlu1 %v1753_v63, %s5376_s4  ;;  %v2621_v63 = vrot.slane %v2593_v57, %v5826_v22  ;;  %v1346_v60 = vrot.slane %v1316_v58, %v5826_v22  ;;  %v2203_v49 = vrot.slane %v2171_v16, %v5826_v22  ;;  %v1940_v20 = vrot.slane %v1924_v30, %v5818_v55 }
0x27f7   :  { %v1570_v28 = vpop.permute.xlu0 %1569 }
0x27f8   :  { %1591 = vst.msk [vmem:[#allocation3 + $0x11] sm:$0x1] %vm1375_vm2, %v1570_v28  ;;  %v1773_v28 = vrot.slane %v1743_v59, %v5826_v22 }
0x27fa   :  { %2206 = vrot.lane.b32.xlu1 %v2179_v62, %s5376_s4  ;;  %v2169_v62 = vcombine.high %v2153_v40, %v2153_v40 }
0x27fb   :  { %v1996_v6 = vpop.permute.xlu0 %1995 }
0x27fc   :  { %2017 = vst.msk [vmem:[#allocation3 + $0x13] sm:$0x1] %vm1375_vm2, %v1996_v6  ;;  %v2199_v1 = vrot.slane %v2169_v62, %v5826_v22  ;;  %v2595_v6 = vcombine.high %v2579_v43, %v2579_v43 }
0x27fe   :  { %2632 = vrot.lane.b32.xlu1 %v2605_v7, %s5376_s4  ;;  %v2625_v7 = vrot.slane %v2595_v6, %v5826_v22 }
0x27ff   :  { %v2422_v9 = vpop.permute.xlu0 %2421 }
0x2800   :  { %2443 = vst.msk [vmem:[#allocation3 + $0x15] sm:$0x1] %vm1375_vm2, %v2422_v9  ;;  %v2744_v9 = vmul.f32 %v5863_v23, %v5805_v34  ;;  %v2597_v34 = vcombine.high %v2593_v57, %v2593_v57 }
0x2802   :  { %1355 = vrot.lane.b32.xlu1 %v1330_v12, %s5376_s4  ;;  %v2629_v48 = vrot.slane %v2597_v34, %v5826_v22 }
0x2803   :  { %v1572_v13 = vpop.permute.xlu0 %1571 }
0x2804   :  { %1592 = vst.msk [vmem:[#allocation3 + $0x19] sm:$0x1] %vm1375_vm2, %v1572_v13  ;;  %v1745_v13 = vcombine.high %v1741_v52, %v1741_v52 }
0x2806   :  { %1782 = vrot.lane.b32.xlu1 %v1757_v3, %s5376_s4 }
0x280a   :  { %2208 = vrot.lane.b32.xlu1 %v2183_v0, %s5376_s4  ;;  %v1777_v0 = vrot.slane %v1745_v13, %v5826_v22 }
0x280e   :  { %2634 = vrot.lane.b32.xlu1 %v2609_v17, %s5376_s4 }
0x2812   :  { %1357 = vrot.lane.b32.xlu1 %v1334_v36, %s5376_s4  ;;  %v1484_v36 = vcombine.high %v5733_v5, %v5733_v5  ;;  %v2383_v5 = vcombine.high %v5847_v11, %v5847_v11 }
0x2814   :  { %v1498_v26 = vrot.slane %v1484_v36, %v5818_v55 }
0x2816   :  { %1784 = vrot.lane.b32.xlu1 %v1761_v19, %s5376_s4  ;;  %v1957_v19 = vcombine.high %v5841_v10, %v5841_v10  ;;  %v2336_v10 = vcombine.high %v5796_v18, %v5796_v18  ;;  %v1514_v45 = vrot.slane %v1498_v26, %v5818_v55  ;;  %v1500_v2 = vcombine.high %v1498_v26, %v1498_v26  ;;  %v2884_v26 = vld [vmem:[%s6336_s8 + $0x8] sm:$0xff] }
0x2818   :  { %v1974_v25 = vrot.slane %v1957_v19, %v5826_v22  ;;  %v1552_v31 = vrot.slane %v1514_v45, %v5826_v22  ;;  %v2350_v33 = vrot.slane %v2336_v10, %v5818_v55  ;;  %v1528_v46 = vrot.slane %v1500_v2, %v5818_v55 }
0x2819   :  { %v1530_v53 = vcombine.high %v1514_v45, %v1514_v45 }
0x281a   :  { %2210 = vrot.lane.b32.xlu1 %v2187_v24, %s5376_s4  ;;  %v2366_v37 = vrot.slane %v2350_v33, %v5818_v55  ;;  %v2352_v43 = vcombine.high %v2350_v33, %v2350_v33 }
0x281b   :  { %v1560_v58 = vrot.slane %v1530_v53, %v5826_v22 }
0x281c   :  { %v2404_v40 = vrot.slane %v2366_v37, %v5826_v22  ;;  %v2380_v52 = vrot.slane %v2352_v43, %v5818_v55 }
0x281e   :  { %2636 = vrot.lane.b32.xlu1 %v2613_v29, %s5376_s4  ;;  %v2400_v29 = vrot.slane %v2383_v5, %v5826_v22  ;;  %v2408_v44 = vrot.slane %v2380_v52, %v5826_v22  ;;  %v2883_v5 = vld [vmem:[%s6336_s8] sm:$0xff] }
0x281f   :  { %v5189_v10 = vpack.c.bf16 %v2884_v26, %v2883_v5 }
0x2821   :  { %5190 = vmatprep.subr.bf16.mxu0 %v5189_v10 }
0x2822   :  { %1359 = vrot.lane.b32.xlu1 %v1338_v35, %s5376_s4  ;;  %v1978_v35 = vrot.slane %v1940_v20, %v5826_v22  ;;  %5192 = vmatpush3.bf16.msra.mxu0 %v5189_v10 }
0x2826   :  { %1786 = vrot.lane.b32.xlu1 %v1765_v39, %s5376_s4 }
0x282a   :  { %2212 = vrot.lane.b32.xlu1 %v2191_v42, %s5376_s4  ;;  %v1926_v42 = vcombine.high %v1924_v30, %v1924_v30  ;;  %v2885_v30 = vld [vmem:[%s6336_s8 + $0x10] sm:$0xff] }
0x282c   :  { %v1954_v50 = vrot.slane %v1926_v42, %v5818_v55 }
0x282e   :  { %2638 = vrot.lane.b32.xlu1 %v2617_v47, %s5376_s4  ;;  %v1556_v47 = vrot.slane %v1528_v46, %v5826_v22  ;;  %v1958_v6 = vcombine.high %v1954_v50, %v1954_v50 }
0x2832   :  { %1361 = vrot.lane.b32.xlu1 %v1342_v38, %s5376_s4  ;;  %v1982_v38 = vrot.slane %v1954_v50, %v5826_v22 }
0x2836   :  { %1788 = vrot.lane.b32.xlu1 %v1769_v54, %s5376_s4 }
0x283a   :  { %2214 = vrot.lane.b32.xlu1 %v2195_v56, %s5376_s4  ;;  %v1956_v56 = vcombine.high %v1940_v20, %v1940_v20 }
0x283e   :  { %2640 = vrot.lane.b32.xlu1 %v2621_v63, %s5376_s4  ;;  %v2382_v63 = vcombine.high %v2366_v37, %v2366_v37 }
0x2842   :  { %1363 = vrot.lane.b32.xlu1 %v1346_v60, %s5376_s4  ;;  %v1986_v60 = vrot.slane %v1956_v56, %v5826_v22 }
0x2846   :  { %1790 = vrot.lane.b32.xlu1 %v1773_v28, %s5376_s4  ;;  %v1532_v28 = vcombine.high %v1528_v46, %v1528_v46 }
0x2848   :  { %v1564_v8 = vrot.slane %v1532_v28, %v5826_v22 }
0x284a   :  { %2216 = vrot.lane.b32.xlu1 %v2199_v1, %s5376_s4  ;;  %v2412_v1 = vrot.slane %v2382_v63, %v5826_v22 }
0x284e   :  { %2642 = vrot.lane.b32.xlu1 %v2625_v7, %s5376_s4 }
0x2850   :  { %v2752_v12 = vpop.permute.xlu1 %2751 }
0x2851   :  { %v2754_v3 = vadd.f32 %v2752_v12, %v2744_v9  ;;  %v1990_v12 = vrot.slane %v1958_v6, %v5826_v22 }
0x2852   :  { %1365 = vrot.lane.b32.xlu1 %v1350_v61, %s5376_s4  ;;  %v2384_v61 = vcombine.high %v2380_v52, %v2380_v52 }
0x2853   :  { %5338 = vtanh.f32 %v2754_v3 }
0x2854   :  { %v1352_v14 = vpop.permute.xlu1 %1351  ;;  %v2416_v3 = vrot.slane %v2384_v61, %v5826_v22 }
0x2855   :  { %1376 = vst.msk [vmem:[#allocation3] sm:$0x1] %vm1375_vm2, %v1352_v14 }
0x2856   :  { %1792 = vrot.lane.b32.xlu1 %v1777_v0, %s5376_s4 }
0x2858   :  { %v1779_v17 = vpop.permute.xlu1 %1778 }
0x2859   :  { %1802 = vst.msk [vmem:[#allocation3 + $0x2] sm:$0x1] %vm1375_vm2, %v1779_v17 }
0x285a   :  { %2218 = vrot.lane.b32.xlu1 %v2203_v49, %s5376_s4 }
0x285c   :  { %v2205_v15 = vpop.permute.xlu1 %2204 }
0x285d   :  { %v5339_v32 = vpop.eup %5338  ;;  %2228 = vst.msk [vmem:[#allocation3 + $0x4] sm:$0x1] %vm1375_vm2, %v2205_v15 }
0x285e   :  { %2757 = vrot.lane.b32.xlu0 %v5339_v32, %s5375_s1  ;;  %2644 = vrot.lane.b32.xlu1 %v2629_v48, %s5376_s4 }
0x2860   :  { %v2631_v24 = vpop.permute.xlu1 %2630 }
0x2861   :  { %2654 = vst.msk [vmem:[#allocation3 + $0x6] sm:$0x1] %vm1375_vm2, %v2631_v24 }
0x2862   :  { %1997 = vrot.lane.b32.xlu0 %v1974_v25, %s5376_s4 }
0x2864   :  { %v1354_v27 = vpop.permute.xlu1 %1353 }
0x2865   :  { %1377 = vst.msk [vmem:[#allocation3 + $0x8] sm:$0x1] %vm1375_vm2, %v1354_v27 }
0x2866   :  { %2423 = vrot.lane.b32.xlu0 %v2400_v29, %s5376_s4 }
0x2868   :  { %v1781_v11 = vpop.permute.xlu1 %1780 }
0x2869   :  { %1803 = vst.msk [vmem:[#allocation3 + $0xa] sm:$0x1] %vm1375_vm2, %v1781_v11  ;;  %v2886_v11 = vld [vmem:[%s6336_s8 + $0x18] sm:$0xff] }
0x286a   :  { %1573 = vrot.lane.b32.xlu0 %v1552_v31, %s5376_s4  ;;  %v5193_v20 = vpack.c.bf16 %v2886_v11, %v2885_v30 }
0x286c   :  { %v2207_v18 = vpop.permute.xlu1 %2206  ;;  %5194 = vmatprep.subr.bf16.mxu0 %v5193_v20 }
0x286d   :  { %2229 = vst.msk [vmem:[#allocation3 + $0xc] sm:$0x1] %vm1375_vm2, %v2207_v18  ;;  %5196 = vmatpush3.bf16.msra.mxu0 %v5193_v20 }
0x286e   :  { %1999 = vrot.lane.b32.xlu0 %v1978_v35, %s5376_s4  ;;  %5002 = vmatprep.subr.mxu0 %v5374_v4 }
0x2870   :  { %v2633_v39 = vpop.permute.xlu1 %2632 }
0x2871   :  { %2655 = vst.msk [vmem:[#allocation3 + $0xe] sm:$0x1] %vm1375_vm2, %v2633_v39 }
0x2872   :  { %2425 = vrot.lane.b32.xlu0 %v2404_v40, %s5376_s4 }
0x2874   :  { %v1356_v41 = vpop.permute.xlu1 %1355 }
0x2875   :  { %1378 = vst.msk [vmem:[#allocation3 + $0x10] sm:$0x1] %vm1375_vm2, %v1356_v41 }
0x2876   :  { %1575 = vrot.lane.b32.xlu0 %v1556_v47, %s5376_s4 }
0x2878   :  { %v1783_v51 = vpop.permute.xlu1 %1782 }
0x2879   :  { %1804 = vst.msk [vmem:[#allocation3 + $0x12] sm:$0x1] %vm1375_vm2, %v1783_v51 }
0x287a   :  { %2001 = vrot.lane.b32.xlu0 %v1982_v38, %s5376_s4 }
0x287c   :  { %v2209_v54 = vpop.permute.xlu1 %2208 }
0x287d   :  { %2230 = vst.msk [vmem:[#allocation3 + $0x14] sm:$0x1] %vm1375_vm2, %v2209_v54 }
0x287e   :  { %2427 = vrot.lane.b32.xlu0 %v2408_v44, %s5376_s4 }
0x2880   :  { %v2635_v57 = vpop.permute.xlu1 %2634 }
0x2881   :  { %2656 = vst.msk [vmem:[#allocation3 + $0x16] sm:$0x1] %vm1375_vm2, %v2635_v57 }
0x2882   :  { %1577 = vrot.lane.b32.xlu0 %v1560_v58, %s5376_s4 }
0x2884   :  { %v1358_v59 = vpop.permute.xlu1 %1357 }
0x2885   :  { %1379 = vst.msk [vmem:[#allocation3 + $0x18] sm:$0x1] %vm1375_vm2, %v1358_v59 }
0x2886   :  { %2003 = vrot.lane.b32.xlu0 %v1986_v60, %s5376_s4 }
0x2888   :  { %v1785_v62 = vpop.permute.xlu1 %1784 }
0x2889   :  { %1805 = vst.msk [vmem:[#allocation3 + $0x1a] sm:$0x1] %vm1375_vm2, %v1785_v62 }
0x288a   :  { %2429 = vrot.lane.b32.xlu0 %v2412_v1, %s5376_s4 }
0x288c   :  { %v2211_v7 = vpop.permute.xlu1 %2210 }
0x288d   :  { %2231 = vst.msk [vmem:[#allocation3 + $0x1c] sm:$0x1] %vm1375_vm2, %v2211_v7 }
0x288e   :  { %1579 = vrot.lane.b32.xlu0 %v1564_v8, %s5376_s4 }
0x2890   :  { %v2637_v9 = vpop.permute.xlu1 %2636 }
0x2891   :  { %2657 = vst.msk [vmem:[#allocation3 + $0x1e] sm:$0x1] %vm1375_vm2, %v2637_v9 }
0x2892   :  { %2005 = vrot.lane.b32.xlu0 %v1990_v12, %s5376_s4 }
0x2894   :  { %v1360_v13 = vpop.permute.xlu1 %1359 }
0x2895   :  { %1380 = vst.msk [vmem:[#allocation3 + $0x20] sm:$0x1] %vm1375_vm2, %v1360_v13 }
0x2896   :  { %2431 = vrot.lane.b32.xlu0 %v2416_v3, %s5376_s4 }
0x2898   :  { %v1787_v14 = vpop.permute.xlu1 %1786 }
0x2899   :  { %1806 = vst.msk [vmem:[#allocation3 + $0x22] sm:$0x1] %vm1375_vm2, %v1787_v14 }
0x289c   :  { %v2213_v0 = vpop.permute.xlu1 %2212 }
0x289d   :  { %2232 = vst.msk [vmem:[#allocation3 + $0x24] sm:$0x1] %vm1375_vm2, %v2213_v0 }
0x28a0   :  { %v2639_v16 = vpop.permute.xlu1 %2638 }
0x28a1   :  { %2658 = vst.msk [vmem:[#allocation3 + $0x26] sm:$0x1] %vm1375_vm2, %v2639_v16 }
0x28a4   :  { %v1362_v17 = vpop.permute.xlu1 %1361 }
0x28a5   :  { %1381 = vst.msk [vmem:[#allocation3 + $0x28] sm:$0x1] %vm1375_vm2, %v1362_v17 }
0x28a8   :  { %v1789_v49 = vpop.permute.xlu1 %1788 }
0x28a9   :  { %1807 = vst.msk [vmem:[#allocation3 + $0x2a] sm:$0x1] %vm1375_vm2, %v1789_v49 }
0x28ac   :  { %v2215_v34 = vpop.permute.xlu1 %2214 }
0x28ad   :  { %2233 = vst.msk [vmem:[#allocation3 + $0x2c] sm:$0x1] %vm1375_vm2, %v2215_v34 }
0x28b0   :  { %v2641_v36 = vpop.permute.xlu1 %2640 }
0x28b1   :  { %2659 = vst.msk [vmem:[#allocation3 + $0x2e] sm:$0x1] %vm1375_vm2, %v2641_v36 }
0x28b4   :  { %v1364_v15 = vpop.permute.xlu1 %1363 }
0x28b5   :  { %1382 = vst.msk [vmem:[#allocation3 + $0x30] sm:$0x1] %vm1375_vm2, %v1364_v15 }
0x28b8   :  { %v1791_v48 = vpop.permute.xlu1 %1790 }
0x28b9   :  { %1808 = vst.msk [vmem:[#allocation3 + $0x32] sm:$0x1] %vm1375_vm2, %v1791_v48 }
0x28bc   :  { %v2217_v19 = vpop.permute.xlu1 %2216 }
0x28bd   :  { %2234 = vst.msk [vmem:[#allocation3 + $0x34] sm:$0x1] %vm1375_vm2, %v2217_v19 }
0x28c0   :  { %v2643_v32 = vpop.permute.xlu1 %2642 }
0x28c1   :  { %2660 = vst.msk [vmem:[#allocation3 + $0x36] sm:$0x1] %vm1375_vm2, %v2643_v32 }
0x28c4   :  { %v1366_v21 = vpop.permute.xlu1 %1365 }
0x28c5   :  { %1383 = vst.msk [vmem:[#allocation3 + $0x38] sm:$0x1] %vm1375_vm2, %v1366_v21  ;;  %v4539_v21 = vld [vmem:[%s6337_s9] ss:$0 sm:$0xff] }
0x28c8   :  { %v1793_v24 = vpop.permute.xlu1 %1792 }
0x28c9   :  { %1809 = vst.msk [vmem:[#allocation3 + $0x3a] sm:$0x1] %vm1375_vm2, %v1793_v24 }
0x28cc   :  { %v2219_v25 = vpop.permute.xlu1 %2218 }
0x28cd   :  { %2235 = vst.msk [vmem:[#allocation3 + $0x3c] sm:$0x1] %vm1375_vm2, %v2219_v25 }
0x28d0   :  { %v2758_v27 = vpop.permute.xlu0 %2757  ;;  %v2645_v29 = vpop.permute.xlu1 %2644 }
0x28d1   :  { %v2760_v45 = vmul.f32 %v5863_v23, %v2758_v27  ;;  %2661 = vst.msk [vmem:[#allocation3 + $0x3e] sm:$0x1] %vm1375_vm2, %v2645_v29 }
0x28d3   :  { %v2769_v31 = vrot.slane %v2760_v45, %v5818_v55  ;;  %v2762_v23 = vcombine.high %v2760_v45, %v2760_v45 }
0x28d4   :  { %v1998_v33 = vpop.permute.xlu0 %1997 }
0x28d5   :  { %v2777_v18 = vcombine.high %v2769_v31, %v2769_v31  ;;  %v2785_v35 = vrot.slane %v2769_v31, %v5818_v55  ;;  %2018 = vst.msk [vmem:[#allocation3 + $0x1b] sm:$0x1] %vm1375_vm2, %v1998_v33  ;;  %v2776_v40 = vrot.slane %v2762_v23, %v5818_v55 }
0x28d7   :  { %v2799_v37 = vrot.slane %v2777_v18, %v5818_v55  ;;  %v2814_v2 = vrot.slane %v2785_v35, %v5826_v22  ;;  %v2807_v46 = vcombine.high %v2785_v35, %v2785_v35  ;;  %v2792_v41 = vrot.slane %v2776_v40, %v5818_v55 }
0x28d8   :  { %v2424_v39 = vpop.permute.xlu0 %2423  ;;  %v2778_v51 = vcombine.high %v2776_v40, %v2776_v40 }
0x28d9   :  { %2444 = vst.msk [vmem:[#allocation3 + $0x1d] sm:$0x1] %vm1375_vm2, %v2424_v39  ;;  %2843 = vrot.lane.b32.xlu0 %v2814_v2, %s5376_s4  ;;  %v2818_v43 = vrot.slane %v2799_v37, %v5826_v22  ;;  %v2822_v50 = vrot.slane %v2807_v46, %v5826_v22  ;;  %v2809_v38 = vcombine.high %v2799_v37, %v2799_v37 }
0x28da   :  { %v2830_v53 = vrot.slane %v2792_v41, %v5826_v22  ;;  %v2806_v54 = vrot.slane %v2778_v51, %v5818_v55  ;;  %v2808_v57 = vcombine.high %v2792_v41, %v2792_v41 }
0x28db   :  { %v2826_v56 = vrot.slane %v2809_v38, %v5826_v22 }
0x28dc   :  { %v1574_v42 = vpop.permute.xlu0 %1573  ;;  %v2834_v63 = vrot.slane %v2806_v54, %v5826_v22  ;;  %v2838_v60 = vrot.slane %v2808_v57, %v5826_v22  ;;  %v2810_v28 = vcombine.high %v2806_v54, %v2806_v54 }
0x28dd   :  { %1593 = vst.msk [vmem:[#allocation3 + $0x21] sm:$0x1] %vm1375_vm2, %v1574_v42  ;;  %2845 = vrot.lane.b32.xlu0 %v2818_v43, %s5376_s4 }
0x28de   :  { %v2842_v62 = vrot.slane %v2810_v28, %v5826_v22 }
0x28e0   :  { %v2000_v47 = vpop.permute.xlu0 %1999 }
0x28e1   :  { %2019 = vst.msk [vmem:[#allocation3 + $0x23] sm:$0x1] %vm1375_vm2, %v2000_v47  ;;  %2847 = vrot.lane.b32.xlu0 %v2822_v50, %s5376_s4  ;;  %v3023_v47 = vld [vmem:[%s6338_s12] sm:$0xff] }
0x28e4   :  { %v2426_v52 = vpop.permute.xlu0 %2425 }
0x28e5   :  { %2445 = vst.msk [vmem:[#allocation3 + $0x25] sm:$0x1] %vm1375_vm2, %v2426_v52  ;;  %2851 = vrot.lane.b32.xlu0 %v2830_v53, %s5376_s4 }
0x28e8   :  { %v1576_v44 = vpop.permute.xlu0 %1575 }
0x28e9   :  { %1594 = vst.msk [vmem:[#allocation3 + $0x29] sm:$0x1] %vm1375_vm2, %v1576_v44  ;;  %2849 = vrot.lane.b32.xlu0 %v2826_v56, %s5376_s4 }
0x28ec   :  { %v2002_v58 = vpop.permute.xlu0 %2001 }
0x28ed   :  { %2020 = vst.msk [vmem:[#allocation3 + $0x2b] sm:$0x1] %vm1375_vm2, %v2002_v58  ;;  %2853 = vrot.lane.b32.xlu0 %v2834_v63, %s5376_s4 }
0x28f0   :  { %v2428_v59 = vpop.permute.xlu0 %2427 }
0x28f1   :  { %2446 = vst.msk [vmem:[#allocation3 + $0x2d] sm:$0x1] %vm1375_vm2, %v2428_v59  ;;  %2855 = vrot.lane.b32.xlu0 %v2838_v60, %s5376_s4 }
0x28f4   :  { %v1578_v55 = vpop.permute.xlu0 %1577 }
0x28f5   :  { %1595 = vst.msk [vmem:[#allocation3 + $0x31] sm:$0x1] %vm1375_vm2, %v1578_v55  ;;  %2857 = vrot.lane.b32.xlu0 %v2842_v62, %s5376_s4 }
0x28f8   :  { %v2004_v1 = vpop.permute.xlu0 %2003 }
0x28f9   :  { %2021 = vst.msk [vmem:[#allocation3 + $0x33] sm:$0x1] %vm1375_vm2, %v2004_v1 }
0x28fc   :  { %v2430_v6 = vpop.permute.xlu0 %2429 }
0x28fd   :  { %2447 = vst.msk [vmem:[#allocation3 + $0x35] sm:$0x1] %vm1375_vm2, %v2430_v6 }
0x2900   :  { %v1580_v7 = vpop.permute.xlu0 %1579 }
0x2901   :  { %1596 = vst.msk [vmem:[#allocation3 + $0x39] sm:$0x1] %vm1375_vm2, %v1580_v7 }
0x2904   :  { %v2006_v8 = vpop.permute.xlu0 %2005 }
0x2905   :  { %2022 = vst.msk [vmem:[#allocation3 + $0x3b] sm:$0x1] %vm1375_vm2, %v2006_v8 }
0x2908   :  { %v2432_v9 = vpop.permute.xlu0 %2431 }
0x2909   :  { %2448 = vst.msk [vmem:[#allocation3 + $0x3d] sm:$0x1] %vm1375_vm2, %v2432_v9 }
0x294b   :  { %v2844_v22 = vpop.permute.xlu0 %2843 }
0x294c   :  { %2867 = vst.msk [vmem:[#allocation3 + $0x7] sm:$0x1] %vm1375_vm2, %v2844_v22 }
0x294f   :  { %v2846_v12 = vpop.permute.xlu0 %2845 }
0x2950   :  { %2868 = vst.msk [vmem:[#allocation3 + $0xf] sm:$0x1] %vm1375_vm2, %v2846_v12 }
0x2953   :  { %v2848_v61 = vpop.permute.xlu0 %2847  ;;  %v2875_v13 = vld [vmem:[#allocation3] sm:$0xff] }
0x2954   :  { %2869 = vst.msk [vmem:[#allocation3 + $0x17] sm:$0x1] %vm1375_vm2, %v2848_v61  ;;  %4965 = vmatprep.mubr.msk.f32.mxu0 %vm64_vm0, %v2875_v13 }
0x2957   :  { %v2852_v3 = vpop.permute.xlu0 %2851  ;;  %v2876_v14 = vld [vmem:[#allocation3 + $0x8] sm:$0xff] }
0x2958   :  { %2871 = vst.msk [vmem:[#allocation3 + $0x27] sm:$0x1] %vm1375_vm2, %v2852_v3  ;;  %4966 = vmatmul.mubr.msk.f32.vlgmr.msra.gmra.mrb[30].mxu0 %vm64_vm0, %v2876_v14 }
0x295b   :  { %v2850_v0 = vpop.permute.xlu0 %2849  ;;  %v2877_v16 = vld [vmem:[#allocation3 + $0x10] sm:$0xff] }
0x295c   :  { %2870 = vst.msk [vmem:[#allocation3 + $0x1f] sm:$0x1] %vm1375_vm2, %v2850_v0  ;;  %4968 = vmatprep.mubr.msk.f32.mxu0 %vm64_vm0, %v2877_v16 }
0x295f   :  { %v2854_v17 = vpop.permute.xlu0 %2853  ;;  %v2879_v36 = vld [vmem:[#allocation3 + $0x20] sm:$0xff] }
0x2960   :  { %2872 = vst.msk [vmem:[#allocation3 + $0x2f] sm:$0x1] %vm1375_vm2, %v2854_v17 }
0x2963   :  { %v2856_v49 = vpop.permute.xlu0 %2855  ;;  %v2878_v34 = vld [vmem:[#allocation3 + $0x18] sm:$0xff] }
0x2964   :  { %2873 = vst.msk [vmem:[#allocation3 + $0x37] sm:$0x1] %vm1375_vm2, %v2856_v49  ;;  %4969 = vmatmul.mubr.msk.f32.gmra.mrb[32].mxu0 %vm64_vm0, %v2878_v34 }
0x2965   :  { %4971 = vmatprep.mubr.msk.f32.mxu0 %vm64_vm0, %v2879_v36 }
0x2967   :  { %v2858_v15 = vpop.permute.xlu0 %2857  ;;  %v2880_v48 = vld [vmem:[#allocation3 + $0x28] sm:$0xff] }
0x2968   :  { %2874 = vst.msk [vmem:[#allocation3 + $0x3f] sm:$0x1] %vm1375_vm2, %v2858_v15  ;;  %4972 = vmatmul.mubr.msk.f32.gmra.mrb[34].mxu0 %vm64_vm0, %v2880_v48 }
0x296b   :  { %v2881_v19 = vld [vmem:[#allocation3 + $0x30] sm:$0xff] }
0x296c   :  { %4974 = vmatprep.mubr.msk.f32.mxu0 %vm64_vm0, %v2881_v19 }
0x296f   :  { %v2882_v32 = vld [vmem:[#allocation3 + $0x38] sm:$0xff] }
0x2970   :  { %4975 = vmatmul.mubr.msk.f32.gmra.mrb[36].mxu0 %vm64_vm0, %v2882_v32 }
0x2971   :  { %5004 = vmatprep.mubr.msk.f32.mxu0 %vm5373_vm1, %v5374_v4 }
0x2a2b   :  { %v4967_v24 = vpop.f32.mrb[30].mxu0 }
0x2a2c   :  { %v6128_v25 = vadd.f32 %v4967_v24, %v4539_v21  ;;  %v2984_v5 = vpop.f32.mrb[31].mxu0 }
0x2a2d   :  { %v6130_v26 = vadd.f32 %v4539_v21, %v2984_v5 }
0x2a2e   :  { %3102 = vrot.lane.b32.xlu0 %v6128_v25, %s5378_s26 }
0x2a2f   :  { %3025 = vrot.lane.b32.xlu1 %v6130_v26, %s5378_s26 }
0x2a37   :  { %v4970_v10 = vpop.f32.mrb[32].mxu0 }
0x2a38   :  { %v6134_v27 = vadd.f32 %v4970_v10, %v4539_v21  ;;  %v2994_v29 = vpop.f32.mrb[33].mxu0 }
0x2a39   :  { %v6136_v45 = vadd.f32 %v4539_v21, %v2994_v29 }
0x2a3a   :  { %3256 = vrot.lane.b32.xlu0 %v6134_v27, %s5378_s26 }
0x2a3b   :  { %v4973_v30 = vpop.f32.mrb[34].mxu0  ;;  %3179 = vrot.lane.b32.xlu1 %v6136_v45, %s5378_s26 }
0x2a3c   :  { %v6140_v11 = vadd.f32 %v4973_v30, %v4539_v21  ;;  %v3004_v31 = vpop.f32.mrb[35].mxu0 }
0x2a3d   :  { %v6142_v20 = vadd.f32 %v4539_v21, %v3004_v31 }
0x2a3e   :  { %3410 = vrot.lane.b32.xlu0 %v6140_v11, %s5378_s26 }
0x2a3f   :  { %3333 = vrot.lane.b32.xlu1 %v6142_v20, %s5378_s26 }
0x2a43   :  { %v4976_v33 = vpop.f32.mrb[36].mxu0 }
0x2a44   :  { %v6146_v18 = vadd.f32 %v4976_v33, %v4539_v21  ;;  %v3014_v35 = vpop.f32.mrb[37].mxu0 }
0x2a45   :  { %v6148_v23 = vadd.f32 %v4539_v21, %v3014_v35 }
0x2a46   :  { %3564 = vrot.lane.b32.xlu0 %v6146_v18, %s5378_s26 }
0x2a47   :  { %3487 = vrot.lane.b32.xlu1 %v6148_v23, %s5378_s26 }
0x2aa0   :  { %v3103_v2 = vpop.permute.xlu0 %3102 }
0x2aa1   :  { %v3026_v37 = vpop.permute.xlu1 %3025 }
0x2aa2   :  { %4978 = vmatpush3.xpose.msk.msra.mxu1 %vm64_vm0, %v3026_v37 }
0x2aa3   :  { %4982 = vmatprep.subr.mxu1 %v5374_v4 }
0x2aa5   :  { %4980 = vmatmul.mubr.msk.f32.vlgmr.msra.gmra.mrb[18].mxu1 %vm64_vm0, %v6130_v26 }
0x2aa6   :  { %4983 = vmatpush3.xpose.msk.msra.mxu1 %vm64_vm0, %v3103_v2  ;;  %4984 = vmatprep.mubr.msk.f32.mxu1 %vm5373_vm1, %v5374_v4 }
0x2aa7   :  { %4987 = vmatprep.subr.mxu1 %v5374_v4 }
0x2aa9   :  { %4985 = vmatmul.mubr.msk.f32.vlgmr.msra.gmra.mrb[20].mxu1 %vm64_vm0, %v6128_v25 }
0x2aaa   :  { %4989 = vmatprep.mubr.msk.f32.mxu1 %vm5373_vm1, %v5374_v4 }
0x2aac   :  { %v3257_v39 = vpop.permute.xlu0 %3256 }
0x2aad   :  { %v3180_v40 = vpop.permute.xlu1 %3179 }
0x2aae   :  { %4988 = vmatpush3.xpose.msk.msra.mxu1 %vm64_vm0, %v3180_v40 }
0x2aaf   :  { %4992 = vmatprep.subr.mxu1 %v5374_v4 }
0x2ab0   :  { %v3411_v46 = vpop.permute.xlu0 %3410 }
0x2ab1   :  { %4990 = vmatmul.mubr.msk.f32.vlgmr.msra.gmra.mrb[22].mxu1 %vm64_vm0, %v6136_v45  ;;  %5003 = vmatpush3.xpose.msk.msra.mxu0 %vm64_vm0, %v3411_v46  ;;  %v3334_v42 = vpop.permute.xlu1 %3333 }
0x2ab2   :  { %4993 = vmatpush3.xpose.msk.msra.mxu1 %vm64_vm0, %v3257_v39  ;;  %4994 = vmatprep.mubr.msk.f32.mxu1 %vm5373_vm1, %v5374_v4 }
0x2ab3   :  { %4997 = vmatprep.subr.mxu1 %v5374_v4  ;;  %5012 = vmatprep.subr.mxu0 %v5374_v4 }
0x2ab4   :  { %5005 = vmatmul.mubr.msk.f32.vlgmr.msra.gmra.mrb[38].mxu0 %vm64_vm0, %v6140_v11 }
0x2ab5   :  { %4995 = vmatmul.mubr.msk.f32.vlgmr.msra.gmra.mrb[24].mxu1 %vm64_vm0, %v6134_v27  ;;  %5014 = vmatprep.mubr.msk.f32.mxu0 %vm5373_vm1, %v5374_v4 }
0x2ab6   :  { %4998 = vmatpush3.xpose.msk.msra.mxu1 %vm64_vm0, %v3334_v42  ;;  %4999 = vmatprep.mubr.msk.f32.mxu1 %vm5373_vm1, %v5374_v4 }
0x2ab7   :  { %5007 = vmatprep.subr.mxu1 %v5374_v4 }
0x2ab8   :  { %v3565_v43 = vpop.permute.xlu0 %3564 }
0x2ab9   :  { %5000 = vmatmul.mubr.msk.f32.vlgmr.msra.gmra.mrb[26].mxu1 %vm64_vm0, %v6142_v20  ;;  %5013 = vmatpush3.xpose.msk.msra.mxu0 %vm64_vm0, %v3565_v43  ;;  %v3488_v41 = vpop.permute.xlu1 %3487 }
0x2aba   :  { %5008 = vmatpush3.xpose.msk.msra.mxu1 %vm64_vm0, %v3488_v41  ;;  %5009 = vmatprep.mubr.msk.f32.mxu1 %vm5373_vm1, %v5374_v4 }
0x2abb   :  { %5017 = vmatprep.subr.mxu1 %v5374_v4  ;;  %5022 = vmatprep.subr.mxu0 %v5374_v4 }
0x2abc   :  { %5015 = vmatmul.mubr.msk.f32.vlgmr.msra.gmra.mrb[40].mxu0 %vm64_vm0, %v6146_v18 }
0x2abd   :  { %5010 = vmatmul.mubr.msk.f32.vlgmr.msra.gmra.mrb[28].mxu1 %vm64_vm0, %v6148_v23  ;;  %5024 = vmatprep.mubr.msk.f32.mxu0 %vm5373_vm1, %v5374_v4 }
0x2abe   :  { %5019 = vmatprep.mubr.msk.f32.mxu1 %vm5373_vm1, %v5374_v4 }
0x2b78   :  { %v3097_v50 = vpop.f32.mrb[18].mxu1 }
0x2b79   :  { %v3098_v51 = vadd.f32 %v3097_v50, %v3023_v47  ;;  %v4981_v38 = vpop.f32.mrb[19].mxu1 }
0x2b7b   :  { %v3641_v52 = vsel %vm3640_vm3, %v3098_v51, -inf }
0x2b7c   :  { %3642 = vmax.xlane.f32.xlu1 %v3641_v52  ;;  %v3174_v53 = vpop.f32.mrb[20].mxu1 }
0x2b7d   :  { %v3175_v54 = vadd.f32 %v3174_v53, %v3023_v47  ;;  %v4986_v44 = vpop.f32.mrb[21].mxu1 }
0x2b7f   :  { %v3644_v56 = vsel %vm3640_vm3, %v3175_v54, -inf }
0x2b80   :  { %3645 = vmax.xlane.f32.xlu0 %v3644_v56 }
0x2b84   :  { %v3251_v57 = vpop.f32.mrb[22].mxu1 }
0x2b85   :  { %v3252_v58 = vadd.f32 %v3251_v57, %v3023_v47  ;;  %v4991_v63 = vpop.f32.mrb[23].mxu1 }
0x2b87   :  { %v3482_v59 = vpop.f32.mrb[38].mxu0  ;;  %v3647_v60 = vsel %vm3640_vm3, %v3252_v58, -inf }
0x2b88   :  { %v5006_v28 = vpop.f32.mrb[39].mxu0  ;;  %3648 = vmax.xlane.f32.xlu0 %v3647_v60  ;;  %v3328_v55 = vpop.f32.mrb[24].mxu1  ;;  %v3483_v6 = vadd.f32 %v3482_v59, %v3023_v47 }
0x2b89   :  { %v6206_v62 = vadd.f32 %v3328_v55, %v3023_v47  ;;  %v4996_v1 = vpop.f32.mrb[25].mxu1 }
0x2b8a   :  { %v3656_v61 = vsel %vm3640_vm3, %v3483_v6, -inf }
0x2b8b   :  { %v3650_v7 = vsel %vm3640_vm3, %v6206_v62, -inf }
0x2b8c   :  { %3651 = vmax.xlane.f32.xlu1 %v3650_v7  ;;  %v3405_v8 = vpop.f32.mrb[26].mxu1 }
0x2b8d   :  { %v3406_v9 = vadd.f32 %v3405_v8, %v3023_v47  ;;  %v5001_v22 = vpop.f32.mrb[27].mxu1 }
0x2b8f   :  { %v3636_v12 = vpop.f32.mrb[40].mxu0  ;;  %v3653_v13 = vsel %vm3640_vm3, %v3406_v9, -inf }
0x2b90   :  { %v3637_v3 = vadd.f32 %v3636_v12, %v3023_v47  ;;  %v5016_v14 = vpop.f32.mrb[41].mxu0  ;;  %3657 = vmax.xlane.f32.xlu1 %v3656_v61  ;;  %3654 = vmax.xlane.f32.xlu0 %v3653_v13  ;;  %v3559_v0 = vpop.f32.mrb[28].mxu1 }
0x2b91   :  { %v3560_v16 = vadd.f32 %v3559_v0, %v3023_v47  ;;  %v5011_v17 = vpop.f32.mrb[29].mxu1 }
0x2b92   :  { %v3662_v49 = vsel %vm3640_vm3, %v3637_v3, -inf  ;;  %v4337_v17 = vld [vmem:[%s6339_s10] sm:$0xff] }
0x2b93   :  { %v3659_v34 = vsel %vm3640_vm3, %v3560_v16, -inf }
0x2b94   :  { %3663 = vmax.xlane.f32.xlu1 %v3662_v49  ;;  %3660 = vmax.xlane.f32.xlu0 %v3659_v34  ;;  %v4338_v49 = vld [vmem:[%s6339_s10 + $0x8] sm:$0xff] }
0x2ba5   :  { %3805 = vrot.lane.b32.xlu1 %v6128_v25, %s5375_s1 }
0x2ba9   :  { %3881 = vrot.lane.b32.xlu1 %v6136_v45, %s5375_s1 }
0x2baa   :  { %3729 = vrot.lane.b32.xlu0 %v6130_v26, %s5375_s1 }
0x2bad   :  { %4033 = vrot.lane.b32.xlu1 %v6142_v20, %s5375_s1 }
0x2bae   :  { %3957 = vrot.lane.b32.xlu0 %v6134_v27, %s5375_s1 }
0x2bb2   :  { %4109 = vrot.lane.b32.xlu0 %v6140_v11, %s5375_s1 }
0x2c09   :  { %v3643_v36 = vpop.xlane.xlu1 %3642 }
0x2c0a   :  { %v3665_v15 = vsub.f32 %v3098_v51, %v3643_v36 }
0x2c0c   :  { %v3673_v48 = vmul.f32 1.442695, %v3665_v15  ;;  %v5197_v15 = vpack.c.bf16 %v4338_v49, %v4337_v17 }
0x2c0d   :  { %v3646_v19 = vpop.xlane.xlu0 %3645 }
0x2c0e   :  { %5340 = vpow2.f32 %v3673_v48  ;;  %v3666_v32 = vsub.f32 %v3175_v54, %v3646_v19 }
0x2c10   :  { %v3675_v21 = vmul.f32 1.442695, %v3666_v32 }
0x2c12   :  { %5342 = vpow2.f32 %v3675_v21 }
0x2c15   :  { %v3649_v24 = vpop.xlane.xlu0 %3648 }
0x2c16   :  { %v3667_v25 = vsub.f32 %v3252_v58, %v3649_v24 }
0x2c18   :  { %v6226_v5 = vpop.eup %5340  ;;  %v3677_v26 = vmul.f32 1.442695, %v3667_v25 }
0x2c19   :  { %v3652_v10 = vpop.xlane.xlu1 %3651  ;;  %v3689_v27 = vsel %vm3640_vm3, %v6226_v5, 0.0 }
0x2c1a   :  { %5344 = vpow2.f32 %v3677_v26  ;;  %3690 = vadd.xlane.f32.xlu0 %v3689_v27  ;;  %v3668_v37 = vsub.f32 %v6206_v62, %v3652_v10 }
0x2c1c   :  { %v6230_v29 = vpop.eup %5342  ;;  %v3679_v47 = vmul.f32 1.442695, %v3668_v37 }
0x2c1d   :  { %v3655_v45 = vpop.xlane.xlu0 %3654  ;;  %v3658_v30 = vpop.xlane.xlu1 %3657  ;;  %v3692_v11 = vsel %vm3640_vm3, %v6230_v29, 0.0 }
0x2c1e   :  { %v3669_v31 = vsub.f32 %v3406_v9, %v3655_v45  ;;  %v3670_v20 = vsub.f32 %v3483_v6, %v3658_v30  ;;  %3693 = vadd.xlane.f32.xlu1 %v3692_v11  ;;  %v4340_v45 = vld [vmem:[%s6339_s10 + $0x18] sm:$0xff] }
0x2c20   :  { %v3681_v33 = vmul.f32 1.442695, %v3669_v31  ;;  %v3683_v35 = vmul.f32 1.442695, %v3670_v20 }
0x2c21   :  { %v3661_v2 = vpop.xlane.xlu0 %3660  ;;  %v3664_v39 = vpop.xlane.xlu1 %3663 }
0x2c22   :  { %5346 = vpow2.f32 %v3681_v33  ;;  %v3671_v40 = vsub.f32 %v3560_v16, %v3661_v2  ;;  %v3672_v46 = vsub.f32 %v3637_v3, %v3664_v39 }
0x2c23   :  { %5348 = vpow2.f32 %v3683_v35 }
0x2c24   :  { %v5345_v42 = vpop.eup %5344  ;;  %v3685_v43 = vmul.f32 1.442695, %v3671_v40  ;;  %v3687_v41 = vmul.f32 1.442695, %v3672_v46 }
0x2c25   :  { %v3730_v50 = vpop.permute.xlu0 %3729  ;;  %v3806_v51 = vpop.permute.xlu1 %3805  ;;  %v3695_v38 = vsel %vm3640_vm3, %v5345_v42, 0.0 }
0x2c26   :  { %5350 = vpow2.f32 %v3685_v43  ;;  %5018 = vmatpush3.msra.mxu1 %v3730_v50  ;;  %3696 = vadd.xlane.f32.xlu0 %v3695_v38 }
0x2c27   :  { %5352 = vpow2.f32 %v3687_v41  ;;  %5023 = vmatpush3.msra.mxu0 %v3806_v51  ;;  %5027 = vmatprep.subr.mxu1 %v5374_v4  ;;  %v4572_v51 = vld [vmem:[%s6340_s11] ss:$0 sm:$0xff] }
0x2c28   :  { %5032 = vmatprep.subr.mxu0 %v5374_v4  ;;  %5354 = vpow2.f32 %v3679_v47 }
0x2c29   :  { %v3958_v28 = vpop.permute.xlu0 %3957  ;;  %v3882_v55 = vpop.permute.xlu1 %3881 }
0x2c2c   :  { %v5347_v52 = vpop.eup %5346 }
0x2c2d   :  { %v6238_v53 = vpop.eup %5348  ;;  %v3701_v54 = vsel %vm3640_vm3, %v5347_v52, 0.0  ;;  %v4110_v62 = vpop.permute.xlu0 %4109 }
0x2c2e   :  { %3702 = vadd.xlane.f32.xlu0 %v3701_v54  ;;  %v3704_v44 = vsel %vm3640_vm3, %v6238_v53, 0.0  ;;  %v4034_v1 = vpop.permute.xlu1 %4033 }
0x2c2f   :  { %3705 = vadd.xlane.f32.xlu1 %v3704_v44 }
0x2c30   :  { %v5351_v56 = vpop.eup %5350 }
0x2c31   :  { %v6243_v57 = vpop.eup %5352  ;;  %v3707_v58 = vsel %vm3640_vm3, %v5351_v56, 0.0 }
0x2c32   :  { %3708 = vadd.xlane.f32.xlu0 %v3707_v58  ;;  %v3710_v63 = vsel %vm3640_vm3, %v6243_v57, 0.0  ;;  %v5355_v59 = vpop.eup %5354 }
0x2c33   :  { %3711 = vadd.xlane.f32.xlu1 %v3710_v63  ;;  %v3698_v60 = vsel %vm3640_vm3, %v5355_v59, 0.0 }
0x2c37   :  { %3699 = vadd.xlane.f32.xlu1 %v3698_v60 }
0x2c48   :  { %4185 = vrot.lane.b32.xlu1 %v6148_v23, %s5375_s1  ;;  %4261 = vrot.lane.b32.xlu0 %v6146_v18, %s5375_s1 }
0x2ca7   :  { %v3691_v6 = vpop.xlane.xlu0 %3690 }
0x2ca8   :  { %5356 = vrcp.f32 %v3691_v6 }
0x2cab   :  { %v3694_v7 = vpop.xlane.xlu1 %3693 }
0x2cac   :  { %5358 = vrcp.f32 %v3694_v7 }
0x2cb2   :  { %v5357_v8 = vpop.eup %5356 }
0x2cb3   :  { %v3721_v9 = vmul.f32 %v5357_v8, %v6226_v5  ;;  %v3697_v22 = vpop.xlane.xlu0 %3696 }
0x2cb4   :  { %5360 = vrcp.f32 %v3697_v22 }
0x2cb5   :  { %5020 = vmatmul.mubr.msk.f32.vlgmr.msra.gmra.mrb[30].mxu1 %vm3640_vm3, %v3721_v9 }
0x2cb6   :  { %v5359_v12 = vpop.eup %5358  ;;  %5028 = vmatpush3.msra.mxu1 %v3882_v55  ;;  %5029 = vmatprep.mubr.msk.f32.mxu1 %vm5373_vm1, %v5374_v4 }
0x2cb7   :  { %v3722_v18 = vmul.f32 %v5359_v12, %v6230_v29  ;;  %5037 = vmatprep.subr.mxu1 %v5374_v4  ;;  %v4339_v29 = vld [vmem:[%s6339_s10 + $0x10] sm:$0xff] }
0x2cb8   :  { %v5201_v30 = vpack.c.bf16 %v4340_v45, %v4339_v29 }
0x2cb9   :  { %5025 = vmatmul.mubr.msk.f32.vlgmr.msra.gmra.mrb[42].mxu0 %vm3640_vm3, %v3722_v18 }
0x2cba   :  { %5033 = vmatpush3.msra.mxu0 %v3958_v28  ;;  %5034 = vmatprep.mubr.msk.f32.mxu0 %vm5373_vm1, %v5374_v4 }
0x2cbb   :  { %v3703_v23 = vpop.xlane.xlu0 %3702  ;;  %5042 = vmatprep.subr.mxu0 %v5374_v4 }
0x2cbc   :  { %5362 = vrcp.f32 %v3703_v23  ;;  %v3706_v61 = vpop.xlane.xlu1 %3705 }
0x2cbe   :  { %v5361_v13 = vpop.eup %5360 }
0x2cbf   :  { %v3723_v3 = vmul.f32 %v5361_v13, %v5345_v42  ;;  %v3709_v14 = vpop.xlane.xlu0 %3708 }
0x2cc0   :  { %5364 = vrcp.f32 %v3709_v14  ;;  %v3712_v0 = vpop.xlane.xlu1 %3711 }
0x2cc1   :  { %5030 = vmatmul.mubr.msk.f32.vlgmr.msra.gmra.mrb[32].mxu1 %vm3640_vm3, %v3723_v3 }
0x2cc2   :  { %5038 = vmatpush3.msra.mxu1 %v4034_v1  ;;  %5039 = vmatprep.mubr.msk.f32.mxu1 %vm5373_vm1, %v5374_v4 }
0x2cc3   :  { %5047 = vmatprep.subr.mxu1 %v5374_v4  ;;  %v4262_v10 = vpop.permute.xlu0 %4261 }
0x2cc4   :  { %v3700_v16 = vpop.xlane.xlu1 %3699 }
0x2cc5   :  { %5366 = vrcp.f32 %v3700_v16 }
0x2cc6   :  { %v5363_v34 = vpop.eup %5362  ;;  %5368 = vrcp.f32 %v3706_v61 }
0x2cc7   :  { %v3725_v36 = vmul.f32 %v5363_v34, %v5347_v52  ;;  %5370 = vrcp.f32 %v3712_v0 }
0x2cc8   :  { %v4186_v48 = vpop.permute.xlu1 %4185 }
0x2cc9   :  { %5040 = vmatmul.mubr.msk.f32.vlgmr.msra.gmra.mrb[34].mxu1 %vm3640_vm3, %v3725_v36 }
0x2cca   :  { %v5365_v19 = vpop.eup %5364  ;;  %5048 = vmatpush3.msra.mxu1 %v4186_v48  ;;  %5049 = vmatprep.mubr.msk.f32.mxu1 %vm5373_vm1, %v5374_v4 }
0x2ccb   :  { %v3727_v32 = vmul.f32 %v5365_v19, %v5351_v56  ;;  %5198 = vmatprep.subr.bf16.mxu1 %v5197_v15 }
0x2ccd   :  { %5050 = vmatmul.mubr.msk.f32.vlgmr.msra.gmra.mrb[36].mxu1 %vm3640_vm3, %v3727_v32 }
0x2cce   :  { %5200 = vmatpush3.bf16.msra.mxu1 %v5197_v15 }
0x2ccf   :  { %v5367_v21 = vpop.eup %5366  ;;  %5202 = vmatprep.subr.bf16.mxu1 %v5201_v30 }
0x2cd0   :  { %v3724_v24 = vmul.f32 %v5367_v21, %v5355_v59  ;;  %v5369_v25 = vpop.eup %5368 }
0x2cd1   :  { %v3726_v5 = vmul.f32 %v5369_v25, %v6238_v53  ;;  %v5371_v26 = vpop.eup %5370 }
0x2cd2   :  { %5035 = vmatmul.mubr.msk.f32.vlgmr.msra.gmra.mrb[44].mxu0 %vm3640_vm3, %v3724_v24  ;;  %v3728_v27 = vmul.f32 %v5371_v26, %v6243_v57  ;;  %5204 = vmatpush3.bf16.msra.mxu1 %v5201_v30 }
0x2cd3   :  { %5043 = vmatpush3.msra.mxu0 %v4110_v62  ;;  %5044 = vmatprep.mubr.msk.f32.mxu0 %vm5373_vm1, %v5374_v4 }
0x2cd4   :  { %5052 = vmatprep.subr.mxu0 %v5374_v4 }
0x2cd6   :  { %5045 = vmatmul.mubr.msk.f32.vlgmr.msra.gmra.mrb[46].mxu0 %vm3640_vm3, %v3726_v5 }
0x2cd7   :  { %5053 = vmatpush3.msra.mxu0 %v4262_v10  ;;  %5054 = vmatprep.mubr.msk.f32.mxu0 %vm5373_vm1, %v5374_v4 }
0x2cda   :  { %5055 = vmatmul.mubr.msk.f32.vlgmr.msra.gmra.mrb[48].mxu0 %vm3640_vm3, %v3728_v27 }
0x2d88   :  { %v3801_v11 = vpop.f32.mrb[30].mxu1 }
0x2d89   :  { %v5021_v31 = vpop.f32.mrb[31].mxu1  ;;  %5065 = vmatprep.mubr.msk.f32.mxu1 %vm64_vm0, %v3801_v11 }
0x2d8c   :  { %v3877_v4 = vpop.f32.mrb[42].mxu0 }
0x2d8d   :  { %v5026_v20 = vpop.f32.mrb[43].mxu0  ;;  %5066 = vmatmul.mubr.msk.f32.vlgmr.msra.gmra.mrb[38].mxu1 %vm64_vm0, %v3877_v4 }
0x2d94   :  { %v3953_v33 = vpop.f32.mrb[32].mxu1 }
0x2d95   :  { %v5031_v35 = vpop.f32.mrb[33].mxu1  ;;  %5068 = vmatprep.mubr.msk.f32.mxu1 %vm64_vm0, %v3953_v33 }
0x2d9c   :  { %v4105_v37 = vpop.f32.mrb[34].mxu1 }
0x2d9d   :  { %v5041_v2 = vpop.f32.mrb[35].mxu1 }
0x2da0   :  { %v4257_v39 = vpop.f32.mrb[36].mxu1 }
0x2da1   :  { %v5051_v40 = vpop.f32.mrb[37].mxu1 }
0x2da5   :  { %v4029_v46 = vpop.f32.mrb[44].mxu0 }
0x2da6   :  { %v5036_v42 = vpop.f32.mrb[45].mxu0  ;;  %5069 = vmatmul.mubr.msk.f32.gmra.mrb[40].mxu1 %vm64_vm0, %v4029_v46 }
0x2da7   :  { %5071 = vmatprep.mubr.msk.f32.mxu1 %vm64_vm0, %v4105_v37 }
0x2da9   :  { %v4181_v43 = vpop.f32.mrb[46].mxu0 }
0x2daa   :  { %v5046_v41 = vpop.f32.mrb[47].mxu0  ;;  %5072 = vmatmul.mubr.msk.f32.gmra.mrb[42].mxu1 %vm64_vm0, %v4181_v43 }
0x2dab   :  { %5074 = vmatprep.mubr.msk.f32.mxu1 %vm64_vm0, %v4257_v39 }
0x2dad   :  { %v4333_v47 = vpop.f32.mrb[48].mxu0 }
0x2dae   :  { %v5056_v50 = vpop.f32.mrb[49].mxu0  ;;  %5075 = vmatmul.mubr.msk.f32.gmra.mrb[44].mxu1 %vm64_vm0, %v4333_v47 }
0x2e60   :  { %v5067_v38 = vpop.f32.mrb[38].mxu1 }
0x2e61   :  { %v4444_v52 = vadd.f32 %v5067_v38, %v4572_v51  ;;  %v4438_v53 = vpop.f32.mrb[39].mxu1 }
0x2e62   :  { %v4439_v54 = vadd.f32 %v4572_v51, %v4438_v53 }
0x2e63   :  { %4478 = vst [vmem:[%s6341_s13 + $0x8] sm:$0xff] %v4444_v52 }
0x2e64   :  { %4477 = vst [vmem:[%s6341_s13] sm:$0xff] %v4439_v54 }
0x2e79   :  { %v5070_v44 = vpop.f32.mrb[40].mxu1 }
0x2e7a   :  { %v4454_v56 = vadd.f32 %v5070_v44, %v4572_v51  ;;  %v4448_v57 = vpop.f32.mrb[41].mxu1 }
0x2e7b   :  { %v4449_v58 = vadd.f32 %v4572_v51, %v4448_v57 }
0x2e7c   :  { %4480 = vst [vmem:[%s6341_s13 + $0x18] sm:$0xff] %v4454_v56 }
0x2e7d   :  { %4479 = vst [vmem:[%s6341_s13 + $0x10] sm:$0xff] %v4449_v58  ;;  %v5073_v63 = vpop.f32.mrb[42].mxu1 }
0x2e7e   :  { %v4464_v59 = vadd.f32 %v5073_v63, %v4572_v51  ;;  %v4458_v60 = vpop.f32.mrb[43].mxu1 }
0x2e7f   :  { %v4459_v28 = vadd.f32 %v4572_v51, %v4458_v60 }
0x2e80   :  { %4482 = vst [vmem:[%s6341_s13 + $0x28] sm:$0xff] %v4464_v59 }
0x2e81   :  { %4481 = vst [vmem:[%s6341_s13 + $0x20] sm:$0xff] %v4459_v28  ;;  %v5076_v55 = vpop.f32.mrb[44].mxu1 }
0x2e82   :  { %v4474_v62 = vadd.f32 %v5076_v55, %v4572_v51  ;;  %v4468_v1 = vpop.f32.mrb[45].mxu1 }
0x2e83   :  { %v4469_v6 = vadd.f32 %v4572_v51, %v4468_v1 }
0x2e84   :  { %4484 = vst [vmem:[%s6341_s13 + $0x38] sm:$0xff] %v4474_v62 }
0x2e85   :  { %4483 = vst [vmem:[%s6341_s13 + $0x30] sm:$0xff] %v4469_v6 }

</bundles_post_ra>
